<compile_context>
chip_gen: v6e
topology: v6e:2x2x1
jax: 0.10.0
libtpu: 0.0.40
codegen_flags: <defaults>
</compile_context>

<pallas_src>
import functools

import jax
import jax.numpy as jnp
from jax.experimental import pallas as pl
from jax.experimental.pallas import tpu as pltpu

LEAKY_SLOPE = 0.2
BN_EPS = 1e-5
HS_EPS = 1e-12
SHRINK_THRES = 0.0025

# Module constants from __init__ (mem_f = 16)
FEATURE_NUM = 2      # mem_f // 8
FEATURE_NUM_2 = 4    # mem_f // 4
FEATURE_NUM_X2 = 8   # mem_f // 2


def _round_up(v, m):
    return ((v + m - 1) // m) * m


def _leaky_relu(x):
    return jnp.where(x >= 0, x, LEAKY_SLOPE * x)


# ----------------------------------- kernel -----------------------------------

def _memae_fc_kernel(shrink_thres, *refs):
    """Fused forward: encoder -> memory addressing -> decoder.

    All activations are [batch_tile, features] (same layout as HBM, so no wrapper
    transposes).  Weights are [in, out] with eval-mode BN already folded in; biases
    are [1, out].  mT_ref is M^T [fea, mem_dim], m_ref is M [mem_dim, fea].
    """
    (x_ref,
     ew1, eb1, ew2, eb2, ew3, eb3, ew4, eb4,
     mT_ref, m_ref,
     dw1, db1, dw2, db2, dw3, db3, dw4, db4,
     out_ref, att_ref) = refs

    def layer(f, w_ref, b_ref, act=True):
        z = jnp.dot(f, w_ref[...], preferred_element_type=jnp.float32) + b_ref[...]
        return _leaky_relu(z) if act else z

    # ---- encoder: 4 x (Linear(+folded BN) + LeakyReLU(0.2)) ----
    f = x_ref[...].astype(jnp.float32)   # [TB, d]
    f = layer(f, ew1, eb1)               # [TB, 2]
    f = layer(f, ew2, eb2)               # [TB, 4]
    f = layer(f, ew3, eb3)               # [TB, 8]
    f = layer(f, ew4, eb4)               # [TB, 8]

    # ---- memory module (MemoryUnit) ----
    logits = jnp.dot(f, mT_ref[...], preferred_element_type=jnp.float32)  # [TB, mem_dim]
    logits = logits - jnp.max(logits, axis=-1, keepdims=True)
    e = jnp.exp(logits)
    att = e * pl.reciprocal(jnp.sum(e, axis=-1, keepdims=True), approx=True)
    if shrink_thres > 0:
        # hard_shrink_relu: (relu(att - lambd) * att) / (|att - lambd| + eps)
        shifted = att - shrink_thres
        att = (jnp.maximum(shifted, 0.0) * att) * pl.reciprocal(
            jnp.abs(shifted) + HS_EPS, approx=True)
        # L1 re-normalization (F.normalize p=1) over mem_dim: exact once-per-row divide.
        att = att / jnp.maximum(jnp.sum(jnp.abs(att), axis=-1, keepdims=True), HS_EPS)
    att_ref[...] = att.astype(att_ref.dtype)                             # [TB, mem_dim]
    f = jnp.dot(att, m_ref[...], preferred_element_type=jnp.float32)     # [TB, 8]

    # ---- decoder: 3 x (Linear(+folded BN) + LeakyReLU(0.2)) + final Linear ----
    f = layer(f, dw1, db1)               # [TB, 8]
    f = layer(f, dw2, db2)               # [TB, 4]
    f = layer(f, dw3, db3)               # [TB, 2]
    out_ref[...] = layer(f, dw4, db4, act=False).astype(out_ref.dtype)   # [TB, d]


# ------------------------- parameter setup (plain JAX glue) -------------------------

def _linear_params(key, fan_in, fan_out):
    kw, kb = jax.random.split(key)
    bound = 1.0 / jnp.sqrt(jnp.float32(fan_in))
    w = jax.random.uniform(kw, (fan_in, fan_out), jnp.float32, -bound, bound)
    b = jax.random.uniform(kb, (1, fan_out), jnp.float32, -bound, bound)
    return w, b


def _bn_params(key, c):
    # Deterministic (gamma, beta, running stats) folded into scale/shift for eval-mode BN.
    k1, k2, k3, k4 = jax.random.split(key, 4)
    gamma = 1.0 + 0.1 * jax.random.normal(k1, (1, c), jnp.float32)
    beta = 0.1 * jax.random.normal(k2, (1, c), jnp.float32)
    r_mean = 0.1 * jax.random.normal(k3, (1, c), jnp.float32)
    r_var = jnp.abs(1.0 + 0.1 * jax.random.normal(k4, (1, c), jnp.float32))
    scale = gamma / jnp.sqrt(r_var + BN_EPS)
    shift = beta - r_mean * scale
    return scale, shift


def init_params(key, in_col_dim, mem_dim):
    enc_dims = [(in_col_dim, FEATURE_NUM), (FEATURE_NUM, FEATURE_NUM_2),
                (FEATURE_NUM_2, FEATURE_NUM_X2), (FEATURE_NUM_X2, FEATURE_NUM_X2)]
    dec_dims = [(FEATURE_NUM_X2, FEATURE_NUM_X2), (FEATURE_NUM_X2, FEATURE_NUM_2),
                (FEATURE_NUM_2, FEATURE_NUM)]
    keys = iter(jax.random.split(key, 16))
    params = []
    for fi, fo in enc_dims:
        w, b = _linear_params(next(keys), fi, fo)
        s, sh = _bn_params(next(keys), fo)
        params += [w, b, s, sh]
    bound = 1.0 / jnp.sqrt(jnp.float32(FEATURE_NUM_X2))
    mem_w = jax.random.uniform(next(keys), (mem_dim, FEATURE_NUM_X2),
                               jnp.float32, -bound, bound)
    params.append(mem_w)
    for fi, fo in dec_dims:
        w, b = _linear_params(next(keys), fi, fo)
        s, sh = _bn_params(next(keys), fo)
        params += [w, b, s, sh]
    w, b = _linear_params(next(keys), FEATURE_NUM, in_col_dim)
    params += [w, b]
    return params


def _fuse_params(params):
    """Fold eval-mode BN into the linears; keep [in, out] / [1, out] layouts."""
    p = list(params)
    idx = 0
    fused = []
    for _ in range(4):                      # encoder
        w, b, s, sh = p[idx], p[idx + 1], p[idx + 2], p[idx + 3]
        idx += 4
        fused += [w * s, b * s + sh]
    m = p[idx]
    idx += 1
    fused += [m.T, m]                       # M^T for addressing, M for retrieval
    for _ in range(3):                      # decoder (BN'd)
        w, b, s, sh = p[idx], p[idx + 1], p[idx + 2], p[idx + 3]
        idx += 4
        fused += [w * s, b * s + sh]
    w, b = p[idx], p[idx + 1]               # final linear (no BN)
    fused += [w, b]
    return fused


# ----------------------------------- wrapper -----------------------------------

def autoencoder_fc_mem(x, params, mem_dim, shrink_thres=SHRINK_THRES, block_batch=2048):
    n, d = x.shape
    io_dtype = x.dtype      # pass bf16 in to halve HBM traffic; math stays f32 in-kernel

    kernel_params = _fuse_params(params)    # 18 small resident tensors (constant index maps)

    # --- batch-tile heuristic ---
    # (1) keep >=4 grid steps when the batch allows it so v7x's 2 TCs both get work;
    # (2) keep double-buffered x/out/att blocks + [TB, mem_dim] softmax temporaries
    #     comfortably under the 32 MiB scoped VMEM limit, even for mem_dim ~ 1000-2000.
    tb = min(block_batch, max(128, _round_up(pl.cdiv(n, 4), 128)))
    bytes_per_row = 4 * (4 * d + 5 * max(mem_dim, 128))
    tb_cap = max(128, ((20 * 1024 * 1024) // bytes_per_row) // 128 * 128)
    tb = min(tb, tb_cap)
    tb = max(8, min(tb, _round_up(n, 8)))   # don't exceed the (sublane-rounded) batch
    grid = (pl.cdiv(n, tb),)                # ragged last block is masked by Pallas; no pad copy

    param_specs = [pl.BlockSpec(tuple(a.shape), lambda i: (0, 0)) for a in kernel_params]

    # Rough cost estimate (advisory only).
    per_row_macs = (d * FEATURE_NUM + FEATURE_NUM * FEATURE_NUM_2
                    + FEATURE_NUM_2 * FEATURE_NUM_X2 + FEATURE_NUM_X2 * FEATURE_NUM_X2
                    + FEATURE_NUM_X2 * mem_dim + mem_dim * FEATURE_NUM_X2
                    + FEATURE_NUM_X2 * FEATURE_NUM_X2 + FEATURE_NUM_X2 * FEATURE_NUM_2
                    + FEATURE_NUM_2 * FEATURE_NUM + FEATURE_NUM * d)
    cost = pl.CostEstimate(
        flops=int(2 * n * per_row_macs),
        transcendentals=int(n * (mem_dim + 4)),
        bytes_accessed=int(x.dtype.itemsize * (2 * n * d + n * mem_dim)
                           + 4 * sum(int(a.size) for a in kernel_params)),
    )

    kernel = functools.partial(_memae_fc_kernel, float(shrink_thres))
    out, att = pl.pallas_call(
        kernel,
        out_shape=(jax.ShapeDtypeStruct((n, d), io_dtype),
                   jax.ShapeDtypeStruct((n, mem_dim), io_dtype)),
        grid_spec=pltpu.PrefetchScalarGridSpec(
            num_scalar_prefetch=0,
            grid=grid,
            in_specs=[pl.BlockSpec((tb, d), lambda i: (i, 0))] + param_specs,
            out_specs=(pl.BlockSpec((tb, d), lambda i: (i, 0)),
                       pl.BlockSpec((tb, mem_dim), lambda i: (i, 0))),
        ),
        compiler_params=pltpu.CompilerParams(
            dimension_semantics=("parallel",),
            vmem_limit_bytes=32 * 1024 * 1024),
        cost_estimate=cost,
    )(x, *kernel_params)

    mem_w = params[16]                      # memory weight M (4 enc layers x 4 tensors)
    return {'output': out, 'att': att, 'mem': mem_w}


# ------------------------- pure-JAX reference for checking -------------------------

def reference(x, params, shrink_thres=SHRINK_THRES):
    p = list(params)

    def lin_bn_lrelu(h, w, b, s, sh):
        z = h @ w + b
        z = z * s + sh
        return jnp.where(z >= 0, z, LEAKY_SLOPE * z)

    f = x
    idx = 0
    for _ in range(4):
        f = lin_bn_lrelu(f, p[idx], p[idx + 1], p[idx + 2], p[idx + 3]); idx += 4
    m = p[idx]; idx += 1
    att = jax.nn.softmax(f @ m.T, axis=1)
    if shrink_thres > 0:
        shifted = att - shrink_thres
        att = (jnp.maximum(shifted, 0.0) * att) / (jnp.abs(shifted) + HS_EPS)
        att = att / jnp.maximum(jnp.sum(jnp.abs(att), axis=1, keepdims=True), HS_EPS)
    f = att @ m
    for _ in range(3):
        f = lin_bn_lrelu(f, p[idx], p[idx + 1], p[idx + 2], p[idx + 3]); idx += 4
    out = f @ p[idx] + p[idx + 1]
    return out, att


if __name__ == "__main__":
    IN_COL_DIM = 128
    MEM_DIM = 64
    BATCH = 256          # tile heuristic picks TB=128 -> two parallel grid steps

    key = jax.random.PRNGKey(0)
    kx, kp = jax.random.split(key)
    x = jax.random.normal(kx, (BATCH, IN_COL_DIM), jnp.float32)
    params = init_params(kp, IN_COL_DIM, MEM_DIM)

    res = autoencoder_fc_mem(x, params, MEM_DIM)
    jax.block_until_ready(res)

    ref_out, ref_att = reference(x, params)
    assert res['output'].shape == (BATCH, IN_COL_DIM)
    assert res['att'].shape == (BATCH, MEM_DIM)
    assert res['mem'].shape == (MEM_DIM, FEATURE_NUM_X2)
    assert jnp.allclose(res['output'], ref_out, rtol=2e-2, atol=2e-2)
    assert jnp.allclose(res['att'], ref_att, rtol=2e-2, atol=2e-2)

    print("KERNEL_OK")
</pallas_src>

<mosaic_0001>
module attributes {stable_mosaic.version = 11 : i64} {
  func.func @_memae_fc_kernel(%arg0: i32, %arg1: memref<128x128xf32, #tpu.memory_space<vmem>>, %arg2: memref<128x2xf32, #tpu.memory_space<vmem>>, %arg3: memref<1x2xf32, #tpu.memory_space<vmem>>, %arg4: memref<2x4xf32, #tpu.memory_space<vmem>>, %arg5: memref<1x4xf32, #tpu.memory_space<vmem>>, %arg6: memref<4x8xf32, #tpu.memory_space<vmem>>, %arg7: memref<1x8xf32, #tpu.memory_space<vmem>>, %arg8: memref<8x8xf32, #tpu.memory_space<vmem>>, %arg9: memref<1x8xf32, #tpu.memory_space<vmem>>, %arg10: memref<8x64xf32, #tpu.memory_space<vmem>>, %arg11: memref<64x8xf32, #tpu.memory_space<vmem>>, %arg12: memref<8x8xf32, #tpu.memory_space<vmem>>, %arg13: memref<1x8xf32, #tpu.memory_space<vmem>>, %arg14: memref<8x4xf32, #tpu.memory_space<vmem>>, %arg15: memref<1x4xf32, #tpu.memory_space<vmem>>, %arg16: memref<4x2xf32, #tpu.memory_space<vmem>>, %arg17: memref<1x2xf32, #tpu.memory_space<vmem>>, %arg18: memref<2x128xf32, #tpu.memory_space<vmem>>, %arg19: memref<1x128xf32, #tpu.memory_space<vmem>>, %arg20: memref<128x128xf32, #tpu.memory_space<vmem>>, %arg21: memref<128x64xf32, #tpu.memory_space<vmem>>) attributes {dimension_semantics = [#tpu.dimension_semantics<parallel>], iteration_bounds = array<i64: 2>, scalar_prefetch = 0 : i64, scratch_operands = 0 : i64, tpu.core_type = #tpu.core_type<tc>, window_params = [{transform_indices = @transform_0, window_bounds = array<i64: 128, 128>}, {pipeline_mode = #tpu.pipeline_mode<synchronous>, transform_indices = @transform_1, window_bounds = array<i64: 128, 2>}, {pipeline_mode = #tpu.pipeline_mode<synchronous>, transform_indices = @transform_2, window_bounds = array<i64: 1, 2>}, {pipeline_mode = #tpu.pipeline_mode<synchronous>, transform_indices = @transform_3, window_bounds = array<i64: 2, 4>}, {pipeline_mode = #tpu.pipeline_mode<synchronous>, transform_indices = @transform_4, window_bounds = array<i64: 1, 4>}, {pipeline_mode = #tpu.pipeline_mode<synchronous>, transform_indices = @transform_5, window_bounds = array<i64: 4, 8>}, {pipeline_mode = #tpu.pipeline_mode<synchronous>, transform_indices = @transform_6, window_bounds = array<i64: 1, 8>}, {pipeline_mode = #tpu.pipeline_mode<synchronous>, transform_indices = @transform_7, window_bounds = array<i64: 8, 8>}, {pipeline_mode = #tpu.pipeline_mode<synchronous>, transform_indices = @transform_8, window_bounds = array<i64: 1, 8>}, {pipeline_mode = #tpu.pipeline_mode<synchronous>, transform_indices = @transform_9, window_bounds = array<i64: 8, 64>}, {pipeline_mode = #tpu.pipeline_mode<synchronous>, transform_indices = @transform_10, window_bounds = array<i64: 64, 8>}, {pipeline_mode = #tpu.pipeline_mode<synchronous>, transform_indices = @transform_11, window_bounds = array<i64: 8, 8>}, {pipeline_mode = #tpu.pipeline_mode<synchronous>, transform_indices = @transform_12, window_bounds = array<i64: 1, 8>}, {pipeline_mode = #tpu.pipeline_mode<synchronous>, transform_indices = @transform_13, window_bounds = array<i64: 8, 4>}, {pipeline_mode = #tpu.pipeline_mode<synchronous>, transform_indices = @transform_14, window_bounds = array<i64: 1, 4>}, {pipeline_mode = #tpu.pipeline_mode<synchronous>, transform_indices = @transform_15, window_bounds = array<i64: 4, 2>}, {pipeline_mode = #tpu.pipeline_mode<synchronous>, transform_indices = @transform_16, window_bounds = array<i64: 1, 2>}, {pipeline_mode = #tpu.pipeline_mode<synchronous>, transform_indices = @transform_17, window_bounds = array<i64: 2, 128>}, {pipeline_mode = #tpu.pipeline_mode<synchronous>, transform_indices = @transform_18, window_bounds = array<i64: 1, 128>}, {transform_indices = @transform_19, window_bounds = array<i64: 128, 128>}, {transform_indices = @transform_20, window_bounds = array<i64: 128, 64>}]} {
    %c0 = arith.constant 0 : index
    %c0_0 = arith.constant 0 : index
    %0 = vector.load %arg1[%c0, %c0_0] : memref<128x128xf32, #tpu.memory_space<vmem>>, vector<128x128xf32>
    %c0_1 = arith.constant 0 : index
    %c0_2 = arith.constant 0 : index
    %1 = vector.load %arg2[%c0_1, %c0_2] : memref<128x2xf32, #tpu.memory_space<vmem>>, vector<128x2xf32>
    %cst = arith.constant dense<0.000000e+00> : vector<128x2xf32>
    %2 = tpu.matmul %0, %1, %cst {dimension_numbers = #tpu.dot_dimension_numbers<[1], [0], [0], [1], [0, 0, 1, 1], [], []>} : vector<128x128xf32>, vector<128x2xf32>, vector<128x2xf32> -> vector<128x2xf32>
    %c0_3 = arith.constant 0 : index
    %c0_4 = arith.constant 0 : index
    %3 = vector.load %arg3[%c0_3, %c0_4] : memref<1x2xf32, #tpu.memory_space<vmem>>, vector<1x2xf32>
    %4 = vector.broadcast %3 : vector<1x2xf32> to vector<128x2xf32>
    %5 = arith.addf %2, %4 : vector<128x2xf32>
    %cst_5 = arith.constant 0.000000e+00 : f32
    %6 = vector.broadcast %cst_5 : f32 to vector<128x2xf32>
    %7 = arith.cmpf oge, %5, %6 : vector<128x2xf32>
    %cst_6 = arith.constant 2.000000e-01 : f32
    %8 = vector.broadcast %cst_6 : f32 to vector<128x2xf32>
    %9 = arith.mulf %8, %5 : vector<128x2xf32>
    %10 = arith.select %7, %5, %9 : vector<128x2xi1>, vector<128x2xf32>
    %c0_7 = arith.constant 0 : index
    %c0_8 = arith.constant 0 : index
    %11 = vector.load %arg4[%c0_7, %c0_8] : memref<2x4xf32, #tpu.memory_space<vmem>>, vector<2x4xf32>
    %cst_9 = arith.constant dense<0.000000e+00> : vector<128x4xf32>
    %12 = tpu.matmul %10, %11, %cst_9 {dimension_numbers = #tpu.dot_dimension_numbers<[1], [0], [0], [1], [0, 0, 1, 1], [], []>} : vector<128x2xf32>, vector<2x4xf32>, vector<128x4xf32> -> vector<128x4xf32>
    %c0_10 = arith.constant 0 : index
    %c0_11 = arith.constant 0 : index
    %13 = vector.load %arg5[%c0_10, %c0_11] : memref<1x4xf32, #tpu.memory_space<vmem>>, vector<1x4xf32>
    %14 = vector.broadcast %13 : vector<1x4xf32> to vector<128x4xf32>
    %15 = arith.addf %12, %14 : vector<128x4xf32>
    %cst_12 = arith.constant 0.000000e+00 : f32
    %16 = vector.broadcast %cst_12 : f32 to vector<128x4xf32>
    %17 = arith.cmpf oge, %15, %16 : vector<128x4xf32>
    %cst_13 = arith.constant 2.000000e-01 : f32
    %18 = vector.broadcast %cst_13 : f32 to vector<128x4xf32>
    %19 = arith.mulf %18, %15 : vector<128x4xf32>
    %20 = arith.select %17, %15, %19 : vector<128x4xi1>, vector<128x4xf32>
    %c0_14 = arith.constant 0 : index
    %c0_15 = arith.constant 0 : index
    %21 = vector.load %arg6[%c0_14, %c0_15] : memref<4x8xf32, #tpu.memory_space<vmem>>, vector<4x8xf32>
    %cst_16 = arith.constant dense<0.000000e+00> : vector<128x8xf32>
    %22 = tpu.matmul %20, %21, %cst_16 {dimension_numbers = #tpu.dot_dimension_numbers<[1], [0], [0], [1], [0, 0, 1, 1], [], []>} : vector<128x4xf32>, vector<4x8xf32>, vector<128x8xf32> -> vector<128x8xf32>
    %c0_17 = arith.constant 0 : index
    %c0_18 = arith.constant 0 : index
    %23 = vector.load %arg7[%c0_17, %c0_18] : memref<1x8xf32, #tpu.memory_space<vmem>>, vector<1x8xf32>
    %24 = vector.broadcast %23 : vector<1x8xf32> to vector<128x8xf32>
    %25 = arith.addf %22, %24 : vector<128x8xf32>
    %cst_19 = arith.constant 0.000000e+00 : f32
    %26 = vector.broadcast %cst_19 : f32 to vector<128x8xf32>
    %27 = arith.cmpf oge, %25, %26 : vector<128x8xf32>
    %cst_20 = arith.constant 2.000000e-01 : f32
    %28 = vector.broadcast %cst_20 : f32 to vector<128x8xf32>
    %29 = arith.mulf %28, %25 : vector<128x8xf32>
    %30 = arith.select %27, %25, %29 : vector<128x8xi1>, vector<128x8xf32>
    %c0_21 = arith.constant 0 : index
    %c0_22 = arith.constant 0 : index
    %31 = vector.load %arg8[%c0_21, %c0_22] : memref<8x8xf32, #tpu.memory_space<vmem>>, vector<8x8xf32>
    %cst_23 = arith.constant dense<0.000000e+00> : vector<128x8xf32>
    %32 = tpu.matmul %30, %31, %cst_23 {dimension_numbers = #tpu.dot_dimension_numbers<[1], [0], [0], [1], [0, 0, 1, 1], [], []>} : vector<128x8xf32>, vector<8x8xf32>, vector<128x8xf32> -> vector<128x8xf32>
    %c0_24 = arith.constant 0 : index
    %c0_25 = arith.constant 0 : index
    %33 = vector.load %arg9[%c0_24, %c0_25] : memref<1x8xf32, #tpu.memory_space<vmem>>, vector<1x8xf32>
    %34 = vector.broadcast %33 : vector<1x8xf32> to vector<128x8xf32>
    %35 = arith.addf %32, %34 : vector<128x8xf32>
    %cst_26 = arith.constant 0.000000e+00 : f32
    %36 = vector.broadcast %cst_26 : f32 to vector<128x8xf32>
    %37 = arith.cmpf oge, %35, %36 : vector<128x8xf32>
    %cst_27 = arith.constant 2.000000e-01 : f32
    %38 = vector.broadcast %cst_27 : f32 to vector<128x8xf32>
    %39 = arith.mulf %38, %35 : vector<128x8xf32>
    %40 = arith.select %37, %35, %39 : vector<128x8xi1>, vector<128x8xf32>
    %c0_28 = arith.constant 0 : index
    %c0_29 = arith.constant 0 : index
    %41 = vector.load %arg10[%c0_28, %c0_29] : memref<8x64xf32, #tpu.memory_space<vmem>>, vector<8x64xf32>
    %cst_30 = arith.constant dense<0.000000e+00> : vector<128x64xf32>
    %42 = tpu.matmul %40, %41, %cst_30 {dimension_numbers = #tpu.dot_dimension_numbers<[1], [0], [0], [1], [0, 0, 1, 1], [], []>} : vector<128x8xf32>, vector<8x64xf32>, vector<128x64xf32> -> vector<128x64xf32>
    %cst_31 = arith.constant dense<0xFF800000> : vector<128xf32>
    %43 = vector.multi_reduction <maximumf>, %42, %cst_31 [1] : vector<128x64xf32> to vector<128xf32>
    %44 = vector.shape_cast %43 : vector<128xf32> to vector<128x1xf32>
    %45 = vector.broadcast %44 : vector<128x1xf32> to vector<128x64xf32>
    %46 = arith.subf %42, %45 : vector<128x64xf32>
    %47 = math.exp %46 : vector<128x64xf32>
    %cst_32 = arith.constant dense<0.000000e+00> : vector<128xf32>
    %48 = vector.multi_reduction <add>, %47, %cst_32 [1] : vector<128x64xf32> to vector<128xf32>
    %49 = vector.shape_cast %48 : vector<128xf32> to vector<128x1xf32>
    %50 = tpu.reciprocal %49 {approx = true} : vector<128x1xf32> -> vector<128x1xf32>
    %51 = vector.broadcast %50 : vector<128x1xf32> to vector<128x64xf32>
    %52 = arith.mulf %47, %51 : vector<128x64xf32>
    %cst_33 = arith.constant 2.500000e-03 : f32
    %53 = vector.broadcast %cst_33 : f32 to vector<128x64xf32>
    %54 = arith.subf %52, %53 : vector<128x64xf32>
    %cst_34 = arith.constant 0.000000e+00 : f32
    %55 = vector.broadcast %cst_34 : f32 to vector<128x64xf32>
    %56 = arith.maximumf %54, %55 : vector<128x64xf32>
    %57 = arith.mulf %56, %52 : vector<128x64xf32>
    %58 = math.absf %54 : vector<128x64xf32>
    %cst_35 = arith.constant 9.99999996E-13 : f32
    %59 = vector.broadcast %cst_35 : f32 to vector<128x64xf32>
    %60 = arith.addf %58, %59 : vector<128x64xf32>
    %61 = tpu.reciprocal %60 {approx = true} : vector<128x64xf32> -> vector<128x64xf32>
    %62 = arith.mulf %57, %61 : vector<128x64xf32>
    %63 = math.absf %62 : vector<128x64xf32>
    %cst_36 = arith.constant dense<0.000000e+00> : vector<128xf32>
    %64 = vector.multi_reduction <add>, %63, %cst_36 [1] : vector<128x64xf32> to vector<128xf32>
    %65 = vector.shape_cast %64 : vector<128xf32> to vector<128x1xf32>
    %cst_37 = arith.constant 9.99999996E-13 : f32
    %66 = vector.broadcast %cst_37 : f32 to vector<128x1xf32>
    %67 = arith.maximumf %65, %66 : vector<128x1xf32>
    %68 = vector.broadcast %67 : vector<128x1xf32> to vector<128x64xf32>
    %69 = arith.divf %62, %68 : vector<128x64xf32>
    %c0_38 = arith.constant 0 : index
    %c0_39 = arith.constant 0 : index
    %70 = vector.load %arg21[%c0_38, %c0_39] : memref<128x64xf32, #tpu.memory_space<vmem>>, vector<128x64xf32>
    tpu.vector_store %arg21[%c0_38, %c0_39], %69 {strides = array<i32>} : memref<128x64xf32, #tpu.memory_space<vmem>>, vector<128x64xf32>,
    %c0_40 = arith.constant 0 : index
    %c0_41 = arith.constant 0 : index
    %71 = vector.load %arg11[%c0_40, %c0_41] : memref<64x8xf32, #tpu.memory_space<vmem>>, vector<64x8xf32>
    %cst_42 = arith.constant dense<0.000000e+00> : vector<128x8xf32>
    %72 = tpu.matmul %69, %71, %cst_42 {dimension_numbers = #tpu.dot_dimension_numbers<[1], [0], [0], [1], [0, 0, 1, 1], [], []>} : vector<128x64xf32>, vector<64x8xf32>, vector<128x8xf32> -> vector<128x8xf32>
    %c0_43 = arith.constant 0 : index
    %c0_44 = arith.constant 0 : index
    %73 = vector.load %arg12[%c0_43, %c0_44] : memref<8x8xf32, #tpu.memory_space<vmem>>, vector<8x8xf32>
    %cst_45 = arith.constant dense<0.000000e+00> : vector<128x8xf32>
    %74 = tpu.matmul %72, %73, %cst_45 {dimension_numbers = #tpu.dot_dimension_numbers<[1], [0], [0], [1], [0, 0, 1, 1], [], []>} : vector<128x8xf32>, vector<8x8xf32>, vector<128x8xf32> -> vector<128x8xf32>
    %c0_46 = arith.constant 0 : index
    %c0_47 = arith.constant 0 : index
    %75 = vector.load %arg13[%c0_46, %c0_47] : memref<1x8xf32, #tpu.memory_space<vmem>>, vector<1x8xf32>
    %76 = vector.broadcast %75 : vector<1x8xf32> to vector<128x8xf32>
    %77 = arith.addf %74, %76 : vector<128x8xf32>
    %cst_48 = arith.constant 0.000000e+00 : f32
    %78 = vector.broadcast %cst_48 : f32 to vector<128x8xf32>
    %79 = arith.cmpf oge, %77, %78 : vector<128x8xf32>
    %cst_49 = arith.constant 2.000000e-01 : f32
    %80 = vector.broadcast %cst_49 : f32 to vector<128x8xf32>
    %81 = arith.mulf %80, %77 : vector<128x8xf32>
    %82 = arith.select %79, %77, %81 : vector<128x8xi1>, vector<128x8xf32>
    %c0_50 = arith.constant 0 : index
    %c0_51 = arith.constant 0 : index
    %83 = vector.load %arg14[%c0_50, %c0_51] : memref<8x4xf32, #tpu.memory_space<vmem>>, vector<8x4xf32>
    %cst_52 = arith.constant dense<0.000000e+00> : vector<128x4xf32>
    %84 = tpu.matmul %82, %83, %cst_52 {dimension_numbers = #tpu.dot_dimension_numbers<[1], [0], [0], [1], [0, 0, 1, 1], [], []>} : vector<128x8xf32>, vector<8x4xf32>, vector<128x4xf32> -> vector<128x4xf32>
    %c0_53 = arith.constant 0 : index
    %c0_54 = arith.constant 0 : index
    %85 = vector.load %arg15[%c0_53, %c0_54] : memref<1x4xf32, #tpu.memory_space<vmem>>, vector<1x4xf32>
    %86 = vector.broadcast %85 : vector<1x4xf32> to vector<128x4xf32>
    %87 = arith.addf %84, %86 : vector<128x4xf32>
    %cst_55 = arith.constant 0.000000e+00 : f32
    %88 = vector.broadcast %cst_55 : f32 to vector<128x4xf32>
    %89 = arith.cmpf oge, %87, %88 : vector<128x4xf32>
    %cst_56 = arith.constant 2.000000e-01 : f32
    %90 = vector.broadcast %cst_56 : f32 to vector<128x4xf32>
    %91 = arith.mulf %90, %87 : vector<128x4xf32>
    %92 = arith.select %89, %87, %91 : vector<128x4xi1>, vector<128x4xf32>
    %c0_57 = arith.constant 0 : index
    %c0_58 = arith.constant 0 : index
    %93 = vector.load %arg16[%c0_57, %c0_58] : memref<4x2xf32, #tpu.memory_space<vmem>>, vector<4x2xf32>
    %cst_59 = arith.constant dense<0.000000e+00> : vector<128x2xf32>
    %94 = tpu.matmul %92, %93, %cst_59 {dimension_numbers = #tpu.dot_dimension_numbers<[1], [0], [0], [1], [0, 0, 1, 1], [], []>} : vector<128x4xf32>, vector<4x2xf32>, vector<128x2xf32> -> vector<128x2xf32>
    %c0_60 = arith.constant 0 : index
    %c0_61 = arith.constant 0 : index
    %95 = vector.load %arg17[%c0_60, %c0_61] : memref<1x2xf32, #tpu.memory_space<vmem>>, vector<1x2xf32>
    %96 = vector.broadcast %95 : vector<1x2xf32> to vector<128x2xf32>
    %97 = arith.addf %94, %96 : vector<128x2xf32>
    %cst_62 = arith.constant 0.000000e+00 : f32
    %98 = vector.broadcast %cst_62 : f32 to vector<128x2xf32>
    %99 = arith.cmpf oge, %97, %98 : vector<128x2xf32>
    %cst_63 = arith.constant 2.000000e-01 : f32
    %100 = vector.broadcast %cst_63 : f32 to vector<128x2xf32>
    %101 = arith.mulf %100, %97 : vector<128x2xf32>
    %102 = arith.select %99, %97, %101 : vector<128x2xi1>, vector<128x2xf32>
    %c0_64 = arith.constant 0 : index
    %c0_65 = arith.constant 0 : index
    %103 = vector.load %arg18[%c0_64, %c0_65] : memref<2x128xf32, #tpu.memory_space<vmem>>, vector<2x128xf32>
    %cst_66 = arith.constant dense<0.000000e+00> : vector<128x128xf32>
    %104 = tpu.matmul %102, %103, %cst_66 {dimension_numbers = #tpu.dot_dimension_numbers<[1], [0], [0], [1], [0, 0, 1, 1], [], []>} : vector<128x2xf32>, vector<2x128xf32>, vector<128x128xf32> -> vector<128x128xf32>
    %c0_67 = arith.constant 0 : index
    %c0_68 = arith.constant 0 : index
    %105 = vector.load %arg19[%c0_67, %c0_68] : memref<1x128xf32, #tpu.memory_space<vmem>>, vector<1x128xf32>
    %106 = vector.broadcast %105 : vector<1x128xf32> to vector<128x128xf32>
    %107 = arith.addf %104, %106 : vector<128x128xf32>
    %c0_69 = arith.constant 0 : index
    %c0_70 = arith.constant 0 : index
    %108 = vector.load %arg20[%c0_69, %c0_70] : memref<128x128xf32, #tpu.memory_space<vmem>>, vector<128x128xf32>
    tpu.vector_store %arg20[%c0_69, %c0_70], %107 {strides = array<i32>} : memref<128x128xf32, #tpu.memory_space<vmem>>, vector<128x128xf32>,
    return
  }
  func.func @transform_0(%arg0: i32) -> (i32, i32) {
    %c0_i32 = arith.constant 0 : i32
    %c0_i32_0 = arith.constant 0 : i32
    return %arg0, %c0_i32 : i32, i32
  }
  func.func @transform_1(%arg0: i32) -> (i32, i32) {
    %c0_i32 = arith.constant 0 : i32
    %c0_i32_0 = arith.constant 0 : i32
    %c0_i32_1 = arith.constant 0 : i32
    return %c0_i32, %c0_i32_0 : i32, i32
  }
  func.func @transform_2(%arg0: i32) -> (i32, i32) {
    %c0_i32 = arith.constant 0 : i32
    %c0_i32_0 = arith.constant 0 : i32
    %c0_i32_1 = arith.constant 0 : i32
    return %c0_i32, %c0_i32_0 : i32, i32
  }
  func.func @transform_3(%arg0: i32) -> (i32, i32) {
    %c0_i32 = arith.constant 0 : i32
    %c0_i32_0 = arith.constant 0 : i32
    %c0_i32_1 = arith.constant 0 : i32
    return %c0_i32, %c0_i32_0 : i32, i32
  }
  func.func @transform_4(%arg0: i32) -> (i32, i32) {
    %c0_i32 = arith.constant 0 : i32
    %c0_i32_0 = arith.constant 0 : i32
    %c0_i32_1 = arith.constant 0 : i32
    return %c0_i32, %c0_i32_0 : i32, i32
  }
  func.func @transform_5(%arg0: i32) -> (i32, i32) {
    %c0_i32 = arith.constant 0 : i32
    %c0_i32_0 = arith.constant 0 : i32
    %c0_i32_1 = arith.constant 0 : i32
    return %c0_i32, %c0_i32_0 : i32, i32
  }
  func.func @transform_6(%arg0: i32) -> (i32, i32) {
    %c0_i32 = arith.constant 0 : i32
    %c0_i32_0 = arith.constant 0 : i32
    %c0_i32_1 = arith.constant 0 : i32
    return %c0_i32, %c0_i32_0 : i32, i32
  }
  func.func @transform_7(%arg0: i32) -> (i32, i32) {
    %c0_i32 = arith.constant 0 : i32
    %c0_i32_0 = arith.constant 0 : i32
    %c0_i32_1 = arith.constant 0 : i32
    return %c0_i32, %c0_i32_0 : i32, i32
  }
  func.func @transform_8(%arg0: i32) -> (i32, i32) {
    %c0_i32 = arith.constant 0 : i32
    %c0_i32_0 = arith.constant 0 : i32
    %c0_i32_1 = arith.constant 0 : i32
    return %c0_i32, %c0_i32_0 : i32, i32
  }
  func.func @transform_9(%arg0: i32) -> (i32, i32) {
    %c0_i32 = arith.constant 0 : i32
    %c0_i32_0 = arith.constant 0 : i32
    %c0_i32_1 = arith.constant 0 : i32
    return %c0_i32, %c0_i32_0 : i32, i32
  }
  func.func @transform_10(%arg0: i32) -> (i32, i32) {
    %c0_i32 = arith.constant 0 : i32
    %c0_i32_0 = arith.constant 0 : i32
    %c0_i32_1 = arith.constant 0 : i32
    return %c0_i32, %c0_i32_0 : i32, i32
  }
  func.func @transform_11(%arg0: i32) -> (i32, i32) {
    %c0_i32 = arith.constant 0 : i32
    %c0_i32_0 = arith.constant 0 : i32
    %c0_i32_1 = arith.constant 0 : i32
    return %c0_i32, %c0_i32_0 : i32, i32
  }
  func.func @transform_12(%arg0: i32) -> (i32, i32) {
    %c0_i32 = arith.constant 0 : i32
    %c0_i32_0 = arith.constant 0 : i32
    %c0_i32_1 = arith.constant 0 : i32
    return %c0_i32, %c0_i32_0 : i32, i32
  }
  func.func @transform_13(%arg0: i32) -> (i32, i32) {
    %c0_i32 = arith.constant 0 : i32
    %c0_i32_0 = arith.constant 0 : i32
    %c0_i32_1 = arith.constant 0 : i32
    return %c0_i32, %c0_i32_0 : i32, i32
  }
  func.func @transform_14(%arg0: i32) -> (i32, i32) {
    %c0_i32 = arith.constant 0 : i32
    %c0_i32_0 = arith.constant 0 : i32
    %c0_i32_1 = arith.constant 0 : i32
    return %c0_i32, %c0_i32_0 : i32, i32
  }
  func.func @transform_15(%arg0: i32) -> (i32, i32) {
    %c0_i32 = arith.constant 0 : i32
    %c0_i32_0 = arith.constant 0 : i32
    %c0_i32_1 = arith.constant 0 : i32
    return %c0_i32, %c0_i32_0 : i32, i32
  }
  func.func @transform_16(%arg0: i32) -> (i32, i32) {
    %c0_i32 = arith.constant 0 : i32
    %c0_i32_0 = arith.constant 0 : i32
    %c0_i32_1 = arith.constant 0 : i32
    return %c0_i32, %c0_i32_0 : i32, i32
  }
  func.func @transform_17(%arg0: i32) -> (i32, i32) {
    %c0_i32 = arith.constant 0 : i32
    %c0_i32_0 = arith.constant 0 : i32
    %c0_i32_1 = arith.constant 0 : i32
    return %c0_i32, %c0_i32_0 : i32, i32
  }
  func.func @transform_18(%arg0: i32) -> (i32, i32) {
    %c0_i32 = arith.constant 0 : i32
    %c0_i32_0 = arith.constant 0 : i32
    %c0_i32_1 = arith.constant 0 : i32
    return %c0_i32, %c0_i32_0 : i32, i32
  }
  func.func @transform_19(%arg0: i32) -> (i32, i32) {
    %c0_i32 = arith.constant 0 : i32
    %c0_i32_0 = arith.constant 0 : i32
    return %arg0, %c0_i32 : i32, i32
  }
  func.func @transform_20(%arg0: i32) -> (i32, i32) {
    %c0_i32 = arith.constant 0 : i32
    %c0_i32_0 = arith.constant 0 : i32
    return %arg0, %c0_i32 : i32, i32
  }
}

</mosaic_0001>

<bundles_post_ra>
// kernel: tpu_custom_call.1
= control target key start
LH: loop header
LB: loop body
LE: loop exit
PB: predicated region body
PF: predicated region fallthrough
CT: control target
= control target key end

     0   :  { %s5583_s0 = inlined_call_operand.hbm [shape: f32[256,128], index: 0, kind: input, shape index: {}]   ;;  %s5584_s1 = inlined_call_operand.vmem [shape: f32[128,2], index: 1, kind: input, shape index: {}]   ;;  %s5585_s2 = inlined_call_operand.vmem [shape: f32[1,2], index: 2, kind: input, shape index: {}]   ;;  %s5586_s3 = inlined_call_operand.vmem [shape: f32[2,4], index: 3, kind: input, shape index: {}]   ;;  %s5587_s4 = inlined_call_operand.vmem [shape: f32[1,4], index: 4, kind: input, shape index: {}]   ;;  %s5588_s5 = inlined_call_operand.vmem [shape: f32[4,8], index: 5, kind: input, shape index: {}]   ;;  %s5589_s6 = inlined_call_operand.vmem [shape: f32[1,8], index: 6, kind: input, shape index: {}]   ;;  %s5590_s7 = inlined_call_operand.vmem [shape: f32[8,8], index: 7, kind: input, shape index: {}]   ;;  %s5591_s8 = inlined_call_operand.vmem [shape: f32[1,8], index: 8, kind: input, shape index: {}]   ;;  %s5592_s9 = inlined_call_operand.vmem [shape: f32[8,64], index: 9, kind: input, shape index: {}]   ;;  %s5593_s10 = inlined_call_operand.vmem [shape: f32[64,8], index: 10, kind: input, shape index: {}]   ;;  %s5594_s11 = inlined_call_operand.vmem [shape: f32[8,8], index: 11, kind: input, shape index: {}]   ;;  %s5595_s12 = inlined_call_operand.vmem [shape: f32[1,8], index: 12, kind: input, shape index: {}]   ;;  %s5596_s13 = inlined_call_operand.vmem [shape: f32[8,4], index: 13, kind: input, shape index: {}]   ;;  %s5597_s14 = inlined_call_operand.vmem [shape: f32[1,4], index: 14, kind: input, shape index: {}]   ;;  %s5598_s15 = inlined_call_operand.vmem [shape: f32[4,2], index: 15, kind: input, shape index: {}]   ;;  %s5599_s16 = inlined_call_operand.vmem [shape: f32[1,2], index: 16, kind: input, shape index: {}]   ;;  %s5600_s17 = inlined_call_operand.vmem [shape: f32[2,128], index: 17, kind: input, shape index: {}]   ;;  %s5601_s18 = inlined_call_operand.vmem [shape: f32[1,128], index: 18, kind: input, shape index: {}]   ;;  %s5602_s19 = inlined_call_operand.hbm [shape: f32[256,128], index: 19, kind: output, shape index: {0}]   ;;  %s5603_s20 = inlined_call_operand.vmem [shape: f32[256,64], index: 20, kind: output, shape index: {1}]  }
   0x1   :  { %5616 = sst [smem:[#allocation14_spill]] %s5583_s0 }
   0x2   :  { %5617 = sst [smem:[#allocation15_spill]] %s5584_s1 }
   0x3   :  { %5618 = sst [smem:[#allocation16_spill]] %s5585_s2 }
   0x4   :  { %5619 = sst [smem:[#allocation17_spill]] %s5586_s3 }
   0x5   :  { %5620 = sst [smem:[#allocation18_spill]] %s5587_s4 }
   0x6   :  { %5621 = sst [smem:[#allocation19_spill]] %s5588_s5 }
   0x7   :  { %5622 = sst [smem:[#allocation20_spill]] %s5599_s16 }
   0x8   :  { %5623 = sst [smem:[#allocation21_spill]] %s5601_s18 }
   0x9   :  { %5624 = sst [smem:[#allocation22_spill]] %s5602_s19 }
   0xa   :  { %26 = vsyncpa [#allocation3], 0 }
   0xb   :  { %28 = vsyncpa [#allocation3 + $0x1], 0 }
   0xc   :  { %29 = vsyncpa [#allocation4], 0 }
   0xd   :  { %31 = vsyncpa [#allocation4 + $0x1], 0  ;;  %s4628_s1 = smov 0   ;;  %s4630_s22 = smov 0  }
   0xe   :  { %s4632_s23 = smov 0   ;;  %s4634_s24 = smov 0  }
   0xf LB: > { %5625 = sst [smem:[#allocation8_spill]] %s4503_s1  ;;  %s4649_s2 = sadd.s32 4294967295, %s4515_s24   ;;  %s4515_s24 = sphi %s4634_s24, %s5655_s24   ;;  %s4511_s23 = sphi %s4632_s23, %s5657_s23   ;;  %s4507_s22 = sphi %s4630_s22, %s5659_s22   ;;  %s4503_s1 = sphi %s4628_s1, %s5658_s1  }
  0x10   : > { %5626 = sst [smem:[#allocation9_spill]] %s4511_s23  ;;  %s3557_s25 = sadd.s32 4294967294, %s4515_s24  }
  0x11   : > { %s4653_s3 = sadd.s32 1, %s4515_s24   ;;  %s44_s26 = sadd.s32 1, %s4511_s23 }
  0x12   : > { %5627 = sst [smem:[#allocation10_spill]] %s4653_s3  ;;  %s41_s27 = ssub.s32 %s4515_s24, %s4653_s3 }
  0x13   : > { %p51_p0 = scmp.ne.s32.totalorder %s4511_s23, %s4507_s22  ;;  %p42_p1 = scmp.eq.s32.totalorder %s41_s27, 0 }
  0x14   : > { %p52_p2 = scmp.eq.s32.totalorder %s4515_s24, 0  ;;  %p57_p3 = scmp.ne.s32.totalorder %s4507_s22, %s4503_s1 }
  0x15   : > { %p58_p4 = scmp.eq.s32.totalorder %s4649_s2, 0  ;;  %p459_p7 = scmp.eq.s32.totalorder %s4649_s2, 1 }
  0x16   : > { %s4665_s28 = scalar_select %p42_p1, %s4511_s23, %s44_s26  }
  0x17   : > { %p4667_p5 = por %p52_p2, %p51_p0  ;;  %p4671_p6 = por %p58_p4, %p57_p3 }
  0x18   : > { %5628 = sst [smem:[#allocation11_spill]] %s4665_s28  ;;  %p465_p8 = scmp.eq.s32.totalorder %s3557_s25, 1 }
  0x19   : > { %s5630_s29 = scalar_select %p4671_p6, 1, 0 }
  0x1a   : > { %p4257_p10 = scmp.lt.s32.totalorder %s4515_s24, 2  ;;  %p4678_p11 = por %p459_p7, %p51_p0 }
  0x1b   : > { %p4682_p12 = por %p465_p8, %p57_p3  ;;  %s565_s21 = sand.u32 1, %s4511_s23  }
  0x1c   : > { %s5631_s30 = scalar_select %p4678_p11, 1, 0 }
  0x1d   : > { %s5633_s0 = scalar_select %p4682_p12, 1, 0 }
  0x1e   : > { %5632 = sst [smem:[#allocation12_spill]] %s5631_s30  ;;  %s3745_s26 = sshll.u32 %s4515_s24, 11 }
  0x1f   : > { %5634 = sst [smem:[#allocation13_spill]] %s5633_s0  ;;  %s3560_s27 = sshll.u32 %s565_s21, 7 }
  0x20   : > { %s5635_s1 = sld [smem:[#allocation14_spill]]  ;;  %s569_s25 = scalar_lea.vmem [#allocation2], %s3560_s27 }
  0x21   : > { %s576_s16 = sshll.u32 %s569_s25, 4  ;;  %p4695_p13 = pnand %p4257_p10, %p4667_p5  ;;  %s4699_s16 = int_to_ptr.vmem [resolvable:$true] %s576_s16 }
  0x22   : > { %s4701_s23 = scalar_lea.sflag [#allocation3], %s565_s21 }
  0x23   : > { %p4425_p1 = pneg %p4695_p13 }
  0x26   : > { %s5636_s19 = smov %s5635_s1  ;;  %s4691_s18 = scalar_lea.hbm %s5635_s1, %s3745_s26 }
  0x27   : > { %s4423_s0 = scalar_lea.hbm %s4691_s18, 2048  ;;  %s4428_s28 = scalar_lea.hbm %s5636_s19, 4096 }
  0x28   : > { %p4424_p0 = scmp.ne.s32.totalorder %s4691_s18, %s4423_s0  ;;  %p4429_p4 = scmp.lt.s32.totalorder %s4691_s18, %s5636_s19 }
  0x29   : > { %p4430_p5 = scmp.lt.s32.totalorder %s4428_s28, %s4423_s0 }
  0x2a   : > { %p4426_p2 = pnand %p4425_p1, %p4424_p0 }
  0x2b   : > { %p4431_p7 = por %p4430_p5, %p4429_p4 }
  0x2c   : > { %p4427_p3 = pneg %p4426_p2 }
  0x2e   : > { %p4432_p8 = pnand %p4431_p7, %p4427_p3 }
  0x30   : > { %4435 = shalt.err (!%p4432_p8)
}
  0x31   : > { %s4436_s21 = scalar_lea.vmem %s4699_s16, 2048  ;;  %s4517_s27 = smov [#allocation2]  }
  0x32   : > { %p4437_p10 = scmp.ne.s32.totalorder %s4699_s16, %s4436_s21  ;;  %s4441_s25 = sshll.u32 %s4517_s27, 4  ;;  %s4442_s25 = int_to_ptr.vmem [resolvable:$false] %s4441_s25 }
  0x33   : > { %s4443_s1 = scalar_lea.vmem %s4442_s25, 4096  ;;  %p4444_p2 = scmp.lt.s32.totalorder %s4699_s16, %s4442_s25 }
  0x34   : > { %p4439_p9 = pnand %p4437_p10, %p4425_p1  ;;  %p4445_p12 = scmp.lt.s32.totalorder %s4443_s1, %s4436_s21 }
  0x36   : > { %p4440_p0 = pneg %p4439_p9  ;;  %p4446_p11 = por %p4445_p12, %p4444_p2 }
  0x38   : > { %p4447_p6 = pnand %p4446_p11, %p4440_p0 }
  0x3a   : > { %4450 = shalt.err (!%p4447_p6)
}
  0x3b   : > { %s4518_s0 = smov 128   ;;  %s4519_s3 = smov 8  }
  0x3c   : > { %4252 = dma.hbm_to_vmem [thread:$0]  (!%p4695_p13), %s4691_s18, 2048, %s4699_s16, %s4701_s23, %s4518_s0, %s4518_s0, %s4519_s3  }
  0x3d   : > { %p3563_p9 = scmp.ge.s32.totalorder %s4515_s24, 1  ;;  %p584_p1 = scmp.lt.s32.totalorder %s4515_s24, 3 }
  0x3f   : > { %p585_p3 = pnand %p3563_p9, %p584_p1 }
  0x40   : > { %s4725_s28 = sand.u32 (!%p585_p3), 1, %s4507_s22   ;;  %p5638_p6 = scmp.ne.s32.totalorder (!%p585_p3), %s5630_s29, 0 }
  0x41   : > { %588 = sbr.rel (%p585_p3) target bundleno = 2646 (0xa56), region = 96  ;;  %s3564_s4 = sshll.u32 (!%p585_p3), %s4725_s28, 7 }
  0x42   : > { %s591_s26 = scalar_lea.sflag (!%p585_p3), [#allocation3], %s4725_s28  ;;  %s4731_s21 = scalar_lea.vmem (!%p585_p3), [#allocation2], %s3564_s4 }
  0x46   : > { %4494 = dma.done.wait (%p5638_p6), %s591_s26, 2048  }
  0x47   : > { %4496 = vsyncadd (%p5638_p6), %s591_s26, 4294965248  ;;  %s5639_s23 = sld [smem:[#allocation15_spill]]  ;;  %v664_v4 = vld [vmem:[%s4731_s21] sm:$0xff]  ;;  %v665_v17 = vld [vmem:[%s4731_s21 + $0x8] sm:$0xff]  ;;  %vm953_vm0 = vcmask 1041408   ;;  %vm1207_vm1 = vcmask 1043456  }
  0x48   : > { %3971 = vmatprep.mubr.f32.mxu0 %v664_v4  ;;  %v666_v18 = vld [vmem:[%s4731_s21 + $0x10] sm:$0xff]  ;;  %v667_v19 = vld [vmem:[%s4731_s21 + $0x18] sm:$0xff]  ;;  %v668_v20 = vld [vmem:[%s4731_s21 + $0x20] sm:$0xff]  ;;  %s5641_s1 = sld [smem:[#allocation17_spill]]  ;;  %vm904_vm2 = vcmask 15360   ;;  %s3566_s3 = sshll.u32 %s4649_s2, 4 }
  0x49   : > { %v669_v21 = vld [vmem:[%s4731_s21 + $0x28] sm:$0xff]  ;;  %v670_v22 = vld [vmem:[%s4731_s21 + $0x30] sm:$0xff]  ;;  %v671_v23 = vld [vmem:[%s4731_s21 + $0x38] sm:$0xff]  ;;  %s5642_s5 = sld [smem:[#allocation19_spill]]  ;;  %p659_p11 = scmp.lt.s32.totalorder %s3566_s3, 31 }
  0x4a   : > { %v672_v24 = vld [vmem:[%s4731_s21 + $0x40] sm:$0xff]  ;;  %v673_v25 = vld [vmem:[%s4731_s21 + $0x48] sm:$0xff]  ;;  %v674_v26 = vld [vmem:[%s4731_s21 + $0x50] sm:$0xff]  ;;  %s5644_s25 = sld [smem:[#allocation18_spill]]  ;;  %s5515_s0 = scalar_lea.vmem [#allocation5], %s3564_s4 }
  0x4b   : > { %v675_v27 = vld [vmem:[%s4731_s21 + $0x58] sm:$0xff]  ;;  %v676_v28 = vld [vmem:[%s4731_s21 + $0x60] sm:$0xff]  ;;  %v677_v29 = vld [vmem:[%s4731_s21 + $0x68] sm:$0xff]  ;;  %s5661_s3 = smov (!%p659_p11, %s3566_s3), 31  ;;  %s5647_s4 = sld [smem:[#allocation12_spill]] }
  0x4c   : > { %v678_v30 = vld [vmem:[%s4731_s21 + $0x70] sm:$0xff]  ;;  %v679_v31 = vld [vmem:[%s4731_s21 + $0x78] sm:$0xff]  ;;  %s5643_s21 = sld [smem:[#allocation16_spill]]  ;;  %s3567_s29 = sshll.u32 %s5661_s3, 3 }
  0x4d   : > { %s5640_s30 = smov %s5639_s23  ;;  %v695_v0 = vld [vmem:[%s5639_s23 + $0x78] sm:$0xff]  ;;  %s5304_s16 = scalar_lea.vmem %s5603_s20, %s3567_s29 }
  0x4e   : > { %v694_v1 = vld [vmem:[%s5640_s30 + $0x70] sm:$0xff]  ;;  %3939 = vmatprep.subr.mxu0 %v695_v0  ;;  %v693_v2 = vld [vmem:[%s5640_s30 + $0x68] sm:$0xff]  ;;  %v692_v3 = vld [vmem:[%s5640_s30 + $0x60] sm:$0xff]  ;;  %s5645_s23 = sld [smem:[#allocation20_spill]]  ;;  %s3746_s3 = sshll.u32 %s4649_s2, 11 }
  0x4f   : > { %3940 = vmatpush3.msra.mxu0 %v695_v0  ;;  %v691_v5 = vld [vmem:[%s5640_s30 + $0x58] sm:$0xff]  ;;  %v690_v6 = vld [vmem:[%s5640_s30 + $0x50] sm:$0xff]  ;;  %v689_v7 = vld [vmem:[%s5640_s30 + $0x48] sm:$0xff]  ;;  %s3455_s29 = sshll.u32 %s5515_s0, 4  ;;  %s4520_s2 = smov [#allocation5]   ;;  %s5538_s29 = int_to_ptr.vmem [resolvable:$true] %s3455_s29 }
  0x50   : > { %3941 = vmatprep.subr.mxu0 %v694_v1  ;;  %v688_v8 = vld [vmem:[%s5640_s30 + $0x40] sm:$0xff]  ;;  %v687_v9 = vld [vmem:[%s5640_s30 + $0x38] sm:$0xff]  ;;  %v686_v10 = vld [vmem:[%s5640_s30 + $0x30] sm:$0xff]  ;;  %s4451_s27 = scalar_lea.vmem %s5538_s29, 2048 }
  0x51   : > { %3942 = vmatpush3.msra.mxu0 %v694_v1  ;;  %v685_v11 = vld [vmem:[%s5640_s30 + $0x28] sm:$0xff]  ;;  %v684_v12 = vld [vmem:[%s5640_s30 + $0x20] sm:$0xff]  ;;  %v683_v13 = vld [vmem:[%s5640_s30 + $0x18] sm:$0xff]  ;;  %p4452_p12 = scmp.ne.s32.totalorder %s5538_s29, %s4451_s27  ;;  %p5649_p13 = scmp.ne.s32.totalorder %s5647_s4, 0 }
  0x52   : > { %3943 = vmatprep.subr.mxu0 %v693_v2  ;;  %v682_v14 = vld [vmem:[%s5640_s30 + $0x10] sm:$0xff]  ;;  %v681_v15 = vld [vmem:[%s5640_s30 + $0x8] sm:$0xff]  ;;  %v680_v16 = vld [vmem:[%s5640_s30] sm:$0xff] }
  0x53   : > { %3944 = vmatpush3.msra.mxu0 %v693_v2  ;;  %v896_v32 = vld [vmem:[%s5641_s1] sm:$0x3]  ;;  %s5646_s1 = sld [smem:[#allocation21_spill]]  ;;  %p4453_p4 = pnand %p4452_p12, %p5649_p13 }
  0x54   : > { %3945 = vmatprep.subr.mxu0 %v692_v3  ;;  %3995 = vmatprep.subr.msk.mxu1 %vm953_vm0, %v896_v32  ;;  %v1150_v33 = vld [vmem:[%s5642_s5] sm:$0xf] }
  0x55   : > { %3946 = vmatpush3.msra.mxu0 %v692_v3  ;;  %3996 = vmatpush3.msk.msra.mxu1 %vm953_vm0, %v896_v32  ;;  %v4813_v34 = vld [vmem:[%s5643_s21] ss:$0 sm:$0xff]  ;;  %p4454_p5 = pneg %p4453_p4 }
  0x56   : > { %3947 = vmatprep.subr.mxu0 %v691_v5  ;;  %4021 = vmatprep.subr.msk.mxu1 %vm1207_vm1, %v1150_v33 }
  0x57   : > { %3948 = vmatpush3.msra.mxu0 %v691_v5 }
  0x58   : > { %3949 = vmatprep.subr.mxu0 %v690_v6 }
  0x59   : > { %3950 = vmatpush3.msra.mxu0 %v690_v6 }
  0x5a   : > { %3951 = vmatprep.subr.mxu0 %v689_v7 }
  0x5b   : > { %3952 = vmatpush3.msra.mxu0 %v689_v7 }
  0x5c   : > { %3953 = vmatprep.subr.mxu0 %v688_v8 }
  0x5d   : > { %3954 = vmatpush3.msra.mxu0 %v688_v8 }
  0x5e   : > { %3955 = vmatprep.subr.mxu0 %v687_v9 }
  0x5f   : > { %3956 = vmatpush3.msra.mxu0 %v687_v9 }
  0x60   : > { %3957 = vmatprep.subr.mxu0 %v686_v10 }
  0x61   : > { %3958 = vmatpush3.msra.mxu0 %v686_v10 }
  0x62   : > { %3959 = vmatprep.subr.mxu0 %v685_v11 }
  0x63   : > { %3960 = vmatpush3.msra.mxu0 %v685_v11 }
  0x64   : > { %3961 = vmatprep.subr.mxu0 %v684_v12 }
  0x65   : > { %3962 = vmatpush3.msra.mxu0 %v684_v12 }
  0x66   : > { %3963 = vmatprep.subr.mxu0 %v683_v13 }
  0x67   : > { %3964 = vmatpush3.msra.mxu0 %v683_v13 }
  0x68   : > { %3965 = vmatprep.subr.mxu0 %v682_v14 }
  0x69   : > { %3966 = vmatpush3.msra.mxu0 %v682_v14 }
  0x6a   : > { %3967 = vmatprep.subr.mxu0 %v681_v15 }
  0x6b   : > { %3968 = vmatpush3.msra.mxu0 %v681_v15 }
  0x6c   : > { %3969 = vmatprep.subr.mxu0 %v680_v16 }
  0x6d   : > { %3970 = vmatpush3.msra.mxu0 %v680_v16 }
  0x6e   : > { %3972 = vmatmul.mubr.f32.vlgmr.msra.gmra.mxu0 %v665_v17 }
  0x6f   : > { %3974 = vmatprep.mubr.f32.mxu0 %v666_v18 }
  0x72   : > { %3975 = vmatmul.mubr.f32.gmra.mxu0 %v667_v19 }
  0x73   : > { %3977 = vmatprep.mubr.f32.mxu0 %v668_v20 }
  0x76   : > { %3978 = vmatmul.mubr.f32.gmra.mxu0 %v669_v21 }
  0x77   : > { %3980 = vmatprep.mubr.f32.mxu0 %v670_v22 }
  0x7a   : > { %3981 = vmatmul.mubr.f32.gmra.mxu0 %v671_v23 }
  0x7b   : > { %3983 = vmatprep.mubr.f32.mxu0 %v672_v24 }
  0x7e   : > { %3984 = vmatmul.mubr.f32.gmra.mxu0 %v673_v25 }
  0x7f   : > { %3986 = vmatprep.mubr.f32.mxu0 %v674_v26 }
  0x82   : > { %3987 = vmatmul.mubr.f32.gmra.mxu0 %v675_v27 }
  0x83   : > { %3989 = vmatprep.mubr.f32.mxu0 %v676_v28 }
  0x86   : > { %3990 = vmatmul.mubr.f32.gmra.mxu0 %v677_v29 }
  0x87   : > { %3992 = vmatprep.mubr.f32.mxu0 %v678_v30 }
  0x8a   : > { %3993 = vmatmul.mubr.f32.gmra.mxu0 %v679_v31 }
 0x12e   : > { %v3973_v35 = vpop.f32.mrf.mxu0 }
 0x12f   : > { %v775_v36 = vadd.f32 %v3973_v35, %v4813_v34 }
 0x130   : > { %v769_v37 = vpop.f32.mrf.mxu0 }
 0x131   : > { %v770_v38 = vadd.f32 %v4813_v34, %v769_v37  ;;  %v865_v39 = vmul.f32 0.2, %v775_v36  ;;  %vm849_vm3 = vcmp.ge.f32.partialorder %v775_v36, 0.0 }
 0x132   : > { %v3976_v40 = vpop.f32.mrf.mxu0 }
 0x133   : > { %v785_v41 = vadd.f32 %v3976_v40, %v4813_v34  ;;  %vm848_vm4 = vcmp.ge.f32.partialorder %v770_v38, 0.0  ;;  %v864_v42 = vmul.f32 0.2, %v770_v38  ;;  %v881_v48 = vsel %vm849_vm3, %v775_v36, %v865_v39  ;;  %v4854_v36 = vld [vmem:[%s5644_s25] ss:$0 sm:$0xff]  ;;  %s4455_s25 = sshll.u32 %s4520_s2, 4  ;;  %s4456_s25 = int_to_ptr.vmem [resolvable:$false] %s4455_s25 }
 0x134   : > { %v779_v43 = vpop.f32.mrf.mxu0  ;;  %p4458_p7 = scmp.lt.s32.totalorder %s5538_s29, %s4456_s25 }
 0x135   : > { %v780_v44 = vadd.f32 %v4813_v34, %v779_v43  ;;  %v880_v45 = vsel %vm848_vm4, %v770_v38, %v864_v42  ;;  %v867_v46 = vmul.f32 0.2, %v785_v41  ;;  %vm851_vm5 = vcmp.ge.f32.partialorder %v785_v41, 0.0 }
 0x136   : > { %v3979_v47 = vpop.f32.mrf.mxu0  ;;  %3997 = vmatprep.mubr.msk.f32.mxu1 %vm904_vm2, %v880_v45 }
 0x137   : > { %vm850_vm6 = vcmp.ge.f32.partialorder %v780_v44, 0.0  ;;  %v866_v49 = vmul.f32 0.2, %v780_v44  ;;  %v795_v50 = vadd.f32 %v3979_v47, %v4813_v34  ;;  %3998 = vmatmul.mubr.msk.f32.vlgmr.msra.gmra.mxu1 %vm904_vm2, %v881_v48  ;;  %v883_v56 = vsel %vm851_vm5, %v785_v41, %v867_v46 }
 0x138   : > { %v789_v51 = vpop.f32.mrf.mxu0  ;;  %4022 = vmatpush3.msk.msra.mxu1 %vm1207_vm1, %v1150_v33 }
 0x139   : > { %v790_v52 = vadd.f32 %v4813_v34, %v789_v51  ;;  %v882_v53 = vsel %vm850_vm6, %v780_v44, %v866_v49  ;;  %v869_v54 = vmul.f32 0.2, %v795_v50  ;;  %vm853_vm7 = vcmp.ge.f32.partialorder %v795_v50, 0.0 }
 0x13a   : > { %v3982_v55 = vpop.f32.mrf.mxu0  ;;  %4000 = vmatprep.mubr.msk.f32.mxu1 %vm904_vm2, %v882_v53  ;;  %vm1158_vm6 = vcmask 31744  }
 0x13b   : > { %vm852_vm8 = vcmp.ge.f32.partialorder %v790_v52, 0.0  ;;  %v868_v57 = vmul.f32 0.2, %v790_v52  ;;  %v805_v58 = vadd.f32 %v3982_v55, %v4813_v34  ;;  %4001 = vmatmul.mubr.msk.f32.gmra.mxu1 %vm904_vm2, %v883_v56  ;;  %v885_v0 = vsel %vm853_vm7, %v795_v50, %v869_v54 }
 0x13c   : > { %v799_v59 = vpop.f32.mrf.mxu0 }
 0x13d   : > { %v800_v60 = vadd.f32 %v4813_v34, %v799_v59  ;;  %v884_v61 = vsel %vm852_vm8, %v790_v52, %v868_v57  ;;  %v871_v62 = vmul.f32 0.2, %v805_v58  ;;  %vm855_vm9 = vcmp.ge.f32.partialorder %v805_v58, 0.0 }
 0x13e   : > { %v3985_v63 = vpop.f32.mrf.mxu0  ;;  %4003 = vmatprep.mubr.msk.f32.mxu1 %vm904_vm2, %v884_v61 }
 0x13f   : > { %vm854_vm10 = vcmp.ge.f32.partialorder %v800_v60, 0.0  ;;  %v870_v1 = vmul.f32 0.2, %v800_v60  ;;  %v815_v2 = vadd.f32 %v3985_v63, %v4813_v34  ;;  %4004 = vmatmul.mubr.msk.f32.gmra.mxu1 %vm904_vm2, %v885_v0  ;;  %v887_v8 = vsel %vm855_vm9, %v805_v58, %v871_v62 }
 0x140   : > { %v809_v3 = vpop.f32.mrf.mxu0 }
 0x141   : > { %v810_v4 = vadd.f32 %v4813_v34, %v809_v3  ;;  %v886_v5 = vsel %vm854_vm10, %v800_v60, %v870_v1  ;;  %v873_v6 = vmul.f32 0.2, %v815_v2  ;;  %vm857_vm11 = vcmp.ge.f32.partialorder %v815_v2, 0.0 }
 0x142   : > { %v3988_v7 = vpop.f32.mrf.mxu0  ;;  %4006 = vmatprep.mubr.msk.f32.mxu1 %vm904_vm2, %v886_v5 }
 0x143   : > { %vm856_vm12 = vcmp.ge.f32.partialorder %v810_v4, 0.0  ;;  %v872_v9 = vmul.f32 0.2, %v810_v4  ;;  %v825_v10 = vadd.f32 %v3988_v7, %v4813_v34  ;;  %4007 = vmatmul.mubr.msk.f32.gmra.mxu1 %vm904_vm2, %v887_v8  ;;  %v889_v16 = vsel %vm857_vm11, %v815_v2, %v873_v6 }
 0x144   : > { %v819_v11 = vpop.f32.mrf.mxu0 }
 0x145   : > { %v820_v12 = vadd.f32 %v4813_v34, %v819_v11  ;;  %v888_v13 = vsel %vm856_vm12, %v810_v4, %v872_v9  ;;  %v875_v14 = vmul.f32 0.2, %v825_v10  ;;  %vm859_vm13 = vcmp.ge.f32.partialorder %v825_v10, 0.0 }
 0x146   : > { %v3991_v15 = vpop.f32.mrf.mxu0  ;;  %4009 = vmatprep.mubr.msk.f32.mxu1 %vm904_vm2, %v888_v13 }
 0x147   : > { %vm858_vm14 = vcmp.ge.f32.partialorder %v820_v12, 0.0  ;;  %v874_v17 = vmul.f32 0.2, %v820_v12  ;;  %v835_v18 = vadd.f32 %v3991_v15, %v4813_v34  ;;  %4010 = vmatmul.mubr.msk.f32.gmra.mxu1 %vm904_vm2, %v889_v16  ;;  %v891_v24 = vsel %vm859_vm13, %v825_v10, %v875_v14 }
 0x148   : > { %v829_v19 = vpop.f32.mrf.mxu0 }
 0x149   : > { %v830_v20 = vadd.f32 %v4813_v34, %v829_v19  ;;  %v890_v21 = vsel %vm858_vm14, %v820_v12, %v874_v17  ;;  %v877_v22 = vmul.f32 0.2, %v835_v18  ;;  %vm861_vm15 = vcmp.ge.f32.partialorder %v835_v18, 0.0 }
 0x14a   : > { %v3994_v23 = vpop.f32.mrf.mxu0  ;;  %4012 = vmatprep.mubr.msk.f32.mxu1 %vm904_vm2, %v890_v21 }
 0x14b   : > { %vm860_vm3 = vcmp.ge.f32.partialorder %v830_v20, 0.0  ;;  %v876_v25 = vmul.f32 0.2, %v830_v20  ;;  %v845_v26 = vadd.f32 %v3994_v23, %v4813_v34  ;;  %4013 = vmatmul.mubr.msk.f32.gmra.mxu1 %vm904_vm2, %v891_v24  ;;  %v893_v31 = vsel %vm861_vm15, %v835_v18, %v877_v22 }
 0x14c   : > { %v839_v27 = vpop.f32.mrf.mxu0 }
 0x14d   : > { %v840_v28 = vadd.f32 %v4813_v34, %v839_v27  ;;  %v892_v29 = vsel %vm860_vm3, %v830_v20, %v876_v25  ;;  %v879_v30 = vmul.f32 0.2, %v845_v26  ;;  %vm863_vm4 = vcmp.ge.f32.partialorder %v845_v26, 0.0  ;;  %v1404_v34 = vld [vmem:[%s5590_s7] sm:$0xff] }
 0x14e   : > { %4015 = vmatprep.mubr.msk.f32.mxu1 %vm904_vm2, %v892_v29  ;;  %4047 = vmatprep.subr.mxu0 %v1404_v34 }
 0x14f   : > { %vm862_vm5 = vcmp.ge.f32.partialorder %v840_v28, 0.0  ;;  %v878_v32 = vmul.f32 0.2, %v840_v28  ;;  %4016 = vmatmul.mubr.msk.f32.gmra.mxu1 %vm904_vm2, %v893_v31  ;;  %v895_v35 = vsel %vm863_vm4, %v845_v26, %v879_v30  ;;  %4243 = vmatprep.subr.mxu1 %v1404_v34 }
 0x150   : > { %4048 = vmatpush3.msra.mxu0 %v1404_v34 }
 0x151   : > { %v894_v33 = vsel %vm862_vm5, %v840_v28, %v878_v32 }
 0x152   : > { %4018 = vmatprep.mubr.msk.f32.mxu1 %vm904_vm2, %v894_v33 }
 0x153   : > { %4019 = vmatmul.mubr.msk.f32.gmra.mxu1 %vm904_vm2, %v895_v35 }
 0x1f7   : > { %v3999_v37 = vpop.f32.mrf.mxu1 }
 0x1f8   : > { %v1029_v38 = vadd.f32 %v3999_v37, %v4854_v36 }
 0x1f9   : > { %v1023_v39 = vpop.f32.mrf.mxu1 }
 0x1fa   : > { %v1024_v40 = vadd.f32 %v4854_v36, %v1023_v39  ;;  %v1119_v41 = vmul.f32 0.2, %v1029_v38  ;;  %vm1103_vm7 = vcmp.ge.f32.partialorder %v1029_v38, 0.0 }
 0x1fb   : > { %v4002_v42 = vpop.f32.mrf.mxu1 }
 0x1fc   : > { %vm1102_vm8 = vcmp.ge.f32.partialorder %v1024_v40, 0.0  ;;  %v1118_v43 = vmul.f32 0.2, %v1024_v40  ;;  %v1039_v44 = vadd.f32 %v4002_v42, %v4854_v36  ;;  %v1135_v48 = vsel %vm1103_vm7, %v1029_v38, %v1119_v41  ;;  %v4897_v38 = vld [vmem:[%s5589_s6] ss:$0 sm:$0xff] }
 0x1fd   : > { %v1033_v45 = vpop.f32.mrf.mxu1 }
 0x1fe   : > { %v1034_v46 = vadd.f32 %v4854_v36, %v1033_v45  ;;  %v1134_v47 = vsel %vm1102_vm8, %v1024_v40, %v1118_v43  ;;  %v1121_v49 = vmul.f32 0.2, %v1039_v44  ;;  %vm1105_vm9 = vcmp.ge.f32.partialorder %v1039_v44, 0.0 }
 0x1ff   : > { %v4005_v50 = vpop.f32.mrf.mxu1  ;;  %4023 = vmatprep.mubr.msk.f32.mxu1 %vm1158_vm6, %v1134_v47 }
 0x200   : > { %vm1104_vm10 = vcmp.ge.f32.partialorder %v1034_v46, 0.0  ;;  %v1120_v51 = vmul.f32 0.2, %v1034_v46  ;;  %v1049_v52 = vadd.f32 %v4005_v50, %v4854_v36  ;;  %4024 = vmatmul.mubr.msk.f32.vlgmr.msra.gmra.mxu1 %vm1158_vm6, %v1135_v48  ;;  %v1137_v58 = vsel %vm1105_vm9, %v1039_v44, %v1121_v49 }
 0x201   : > { %v1043_v53 = vpop.f32.mrf.mxu1  ;;  %4244 = vmatpush3.msra.mxu1 %v1404_v34 }
 0x202   : > { %v1044_v54 = vadd.f32 %v4854_v36, %v1043_v53  ;;  %v1136_v55 = vsel %vm1104_vm10, %v1034_v46, %v1120_v51  ;;  %v1123_v56 = vmul.f32 0.2, %v1049_v52  ;;  %vm1107_vm11 = vcmp.ge.f32.partialorder %v1049_v52, 0.0 }
 0x203   : > { %v4008_v57 = vpop.f32.mrf.mxu1  ;;  %4026 = vmatprep.mubr.msk.f32.mxu1 %vm1158_vm6, %v1136_v55 }
 0x204   : > { %vm1106_vm12 = vcmp.ge.f32.partialorder %v1044_v54, 0.0  ;;  %v1122_v59 = vmul.f32 0.2, %v1044_v54  ;;  %v1059_v60 = vadd.f32 %v4008_v57, %v4854_v36  ;;  %4027 = vmatmul.mubr.msk.f32.gmra.mxu1 %vm1158_vm6, %v1137_v58  ;;  %v1139_v2 = vsel %vm1107_vm11, %v1049_v52, %v1123_v56 }
 0x205   : > { %v1053_v61 = vpop.f32.mrf.mxu1  ;;  %vm1412_vm11 = vcmask 64512  }
 0x206   : > { %v1054_v62 = vadd.f32 %v4854_v36, %v1053_v61  ;;  %v1138_v63 = vsel %vm1106_vm12, %v1044_v54, %v1122_v59  ;;  %v1125_v0 = vmul.f32 0.2, %v1059_v60  ;;  %vm1109_vm13 = vcmp.ge.f32.partialorder %v1059_v60, 0.0 }
 0x207   : > { %v4011_v1 = vpop.f32.mrf.mxu1  ;;  %4029 = vmatprep.mubr.msk.f32.mxu1 %vm1158_vm6, %v1138_v63 }
 0x208   : > { %vm1108_vm14 = vcmp.ge.f32.partialorder %v1054_v62, 0.0  ;;  %v1124_v3 = vmul.f32 0.2, %v1054_v62  ;;  %v1069_v4 = vadd.f32 %v4011_v1, %v4854_v36  ;;  %4030 = vmatmul.mubr.msk.f32.gmra.mxu1 %vm1158_vm6, %v1139_v2  ;;  %v1141_v10 = vsel %vm1109_vm13, %v1059_v60, %v1125_v0 }
 0x209   : > { %v1063_v5 = vpop.f32.mrf.mxu1 }
 0x20a   : > { %v1064_v6 = vadd.f32 %v4854_v36, %v1063_v5  ;;  %v1140_v7 = vsel %vm1108_vm14, %v1054_v62, %v1124_v3  ;;  %v1127_v8 = vmul.f32 0.2, %v1069_v4  ;;  %vm1111_vm15 = vcmp.ge.f32.partialorder %v1069_v4, 0.0 }
 0x20b   : > { %v4014_v9 = vpop.f32.mrf.mxu1  ;;  %4032 = vmatprep.mubr.msk.f32.mxu1 %vm1158_vm6, %v1140_v7 }
 0x20c   : > { %vm1110_vm3 = vcmp.ge.f32.partialorder %v1064_v6, 0.0  ;;  %v1126_v11 = vmul.f32 0.2, %v1064_v6  ;;  %v1079_v12 = vadd.f32 %v4014_v9, %v4854_v36  ;;  %4033 = vmatmul.mubr.msk.f32.gmra.mxu1 %vm1158_vm6, %v1141_v10  ;;  %v1143_v18 = vsel %vm1111_vm15, %v1069_v4, %v1127_v8 }
 0x20d   : > { %v1073_v13 = vpop.f32.mrf.mxu1 }
 0x20e   : > { %v1074_v14 = vadd.f32 %v4854_v36, %v1073_v13  ;;  %v1142_v15 = vsel %vm1110_vm3, %v1064_v6, %v1126_v11  ;;  %v1129_v16 = vmul.f32 0.2, %v1079_v12  ;;  %vm1113_vm4 = vcmp.ge.f32.partialorder %v1079_v12, 0.0 }
 0x20f   : > { %v4017_v17 = vpop.f32.mrf.mxu1  ;;  %4035 = vmatprep.mubr.msk.f32.mxu1 %vm1158_vm6, %v1142_v15 }
 0x210   : > { %vm1112_vm5 = vcmp.ge.f32.partialorder %v1074_v14, 0.0  ;;  %v1128_v19 = vmul.f32 0.2, %v1074_v14  ;;  %v1089_v20 = vadd.f32 %v4017_v17, %v4854_v36  ;;  %4036 = vmatmul.mubr.msk.f32.gmra.mxu1 %vm1158_vm6, %v1143_v18  ;;  %v1145_v26 = vsel %vm1113_vm4, %v1079_v12, %v1129_v16 }
 0x211   : > { %v1083_v21 = vpop.f32.mrf.mxu1 }
 0x212   : > { %v1084_v22 = vadd.f32 %v4854_v36, %v1083_v21  ;;  %v1144_v23 = vsel %vm1112_vm5, %v1074_v14, %v1128_v19  ;;  %v1131_v24 = vmul.f32 0.2, %v1089_v20  ;;  %vm1115_vm7 = vcmp.ge.f32.partialorder %v1089_v20, 0.0 }
 0x213   : > { %v4020_v25 = vpop.f32.mrf.mxu1  ;;  %4038 = vmatprep.mubr.msk.f32.mxu1 %vm1158_vm6, %v1144_v23 }
 0x214   : > { %vm1114_vm8 = vcmp.ge.f32.partialorder %v1084_v22, 0.0  ;;  %v1130_v27 = vmul.f32 0.2, %v1084_v22  ;;  %v1099_v28 = vadd.f32 %v4020_v25, %v4854_v36  ;;  %4039 = vmatmul.mubr.msk.f32.gmra.mxu1 %vm1158_vm6, %v1145_v26  ;;  %v1147_v33 = vsel %vm1115_vm7, %v1089_v20, %v1131_v24 }
 0x215   : > { %v1093_v29 = vpop.f32.mrf.mxu1 }
 0x216   : > { %v1094_v30 = vadd.f32 %v4854_v36, %v1093_v29  ;;  %v1146_v31 = vsel %vm1114_vm8, %v1084_v22, %v1130_v27  ;;  %v1133_v32 = vmul.f32 0.2, %v1099_v28  ;;  %vm1117_vm9 = vcmp.ge.f32.partialorder %v1099_v28, 0.0  ;;  %v4891_v36 = vld [vmem:[%s5592_s9] sm:$0xff] }
 0x217   : > { %4041 = vmatprep.mubr.msk.f32.mxu1 %vm1158_vm6, %v1146_v31  ;;  %4073 = vmatprep.subr.mxu1 %v4891_v36 }
 0x218   : > { %vm1116_vm10 = vcmp.ge.f32.partialorder %v1094_v30, 0.0  ;;  %v1132_v35 = vmul.f32 0.2, %v1094_v30  ;;  %4042 = vmatmul.mubr.msk.f32.gmra.mxu1 %vm1158_vm6, %v1147_v33  ;;  %v1149_v37 = vsel %vm1117_vm9, %v1099_v28, %v1133_v32 }
 0x21a   : > { %v1148_v34 = vsel %vm1116_vm10, %v1094_v30, %v1132_v35 }
 0x21b   : > { %4044 = vmatprep.mubr.msk.f32.mxu1 %vm1158_vm6, %v1148_v34 }
 0x21c   : > { %4045 = vmatmul.mubr.msk.f32.gmra.mxu1 %vm1158_vm6, %v1149_v37 }
 0x2c0   : > { %v4025_v39 = vpop.f32.mrf.mxu1 }
 0x2c1   : > { %v1283_v40 = vadd.f32 %v4025_v39, %v4897_v38 }
 0x2c2   : > { %v1277_v41 = vpop.f32.mrf.mxu1 }
 0x2c3   : > { %v1278_v42 = vadd.f32 %v4897_v38, %v1277_v41  ;;  %v1373_v43 = vmul.f32 0.2, %v1283_v40  ;;  %vm1357_vm12 = vcmp.ge.f32.partialorder %v1283_v40, 0.0 }
 0x2c4   : > { %v4028_v44 = vpop.f32.mrf.mxu1 }
 0x2c5   : > { %vm1356_vm13 = vcmp.ge.f32.partialorder %v1278_v42, 0.0  ;;  %v1372_v45 = vmul.f32 0.2, %v1278_v42  ;;  %v1293_v46 = vadd.f32 %v4028_v44, %v4897_v38  ;;  %v1389_v50 = vsel %vm1357_vm12, %v1283_v40, %v1373_v43 }
 0x2c6   : > { %v1287_v47 = vpop.f32.mrf.mxu1 }
 0x2c7   : > { %v1288_v48 = vadd.f32 %v4897_v38, %v1287_v47  ;;  %v1388_v49 = vsel %vm1356_vm13, %v1278_v42, %v1372_v45  ;;  %v1375_v51 = vmul.f32 0.2, %v1293_v46  ;;  %vm1359_vm14 = vcmp.ge.f32.partialorder %v1293_v46, 0.0 }
 0x2c8   : > { %v4031_v52 = vpop.f32.mrf.mxu1  ;;  %4049 = vmatprep.mubr.msk.f32.mxu0 %vm1412_vm11, %v1388_v49 }
 0x2c9   : > { %vm1358_vm15 = vcmp.ge.f32.partialorder %v1288_v48, 0.0  ;;  %v1374_v53 = vmul.f32 0.2, %v1288_v48  ;;  %v1303_v54 = vadd.f32 %v4031_v52, %v4897_v38  ;;  %4050 = vmatmul.mubr.msk.f32.vlgmr.msra.gmra.mxu0 %vm1412_vm11, %v1389_v50  ;;  %v1391_v60 = vsel %vm1359_vm14, %v1293_v46, %v1375_v51 }
 0x2ca   : > { %v1297_v55 = vpop.f32.mrf.mxu1 }
 0x2cb   : > { %v1298_v56 = vadd.f32 %v4897_v38, %v1297_v55  ;;  %v1390_v57 = vsel %vm1358_vm15, %v1288_v48, %v1374_v53  ;;  %v1377_v58 = vmul.f32 0.2, %v1303_v54  ;;  %vm1361_vm3 = vcmp.ge.f32.partialorder %v1303_v54, 0.0 }
 0x2cc   : > { %v4034_v59 = vpop.f32.mrf.mxu1  ;;  %4052 = vmatprep.mubr.msk.f32.mxu0 %vm1412_vm11, %v1390_v57 }
 0x2cd   : > { %vm1360_vm4 = vcmp.ge.f32.partialorder %v1298_v56, 0.0  ;;  %v1376_v61 = vmul.f32 0.2, %v1298_v56  ;;  %v1313_v62 = vadd.f32 %v4034_v59, %v4897_v38  ;;  %4053 = vmatmul.mubr.msk.f32.gmra.mxu0 %vm1412_vm11, %v1391_v60  ;;  %v1393_v4 = vsel %vm1361_vm3, %v1303_v54, %v1377_v58 }
 0x2ce   : > { %v1307_v63 = vpop.f32.mrf.mxu1 }
 0x2cf   : > { %v1308_v0 = vadd.f32 %v4897_v38, %v1307_v63  ;;  %v1392_v1 = vsel %vm1360_vm4, %v1298_v56, %v1376_v61  ;;  %v1379_v2 = vmul.f32 0.2, %v1313_v62  ;;  %vm1363_vm5 = vcmp.ge.f32.partialorder %v1313_v62, 0.0 }
 0x2d0   : > { %v4037_v3 = vpop.f32.mrf.mxu1  ;;  %4055 = vmatprep.mubr.msk.f32.mxu0 %vm1412_vm11, %v1392_v1 }
 0x2d1   : > { %vm1362_vm7 = vcmp.ge.f32.partialorder %v1308_v0, 0.0  ;;  %v1378_v5 = vmul.f32 0.2, %v1308_v0  ;;  %v1323_v6 = vadd.f32 %v4037_v3, %v4897_v38  ;;  %4056 = vmatmul.mubr.msk.f32.gmra.mxu0 %vm1412_vm11, %v1393_v4  ;;  %v1395_v12 = vsel %vm1363_vm5, %v1313_v62, %v1379_v2 }
 0x2d2   : > { %v1317_v7 = vpop.f32.mrf.mxu1 }
 0x2d3   : > { %v1318_v8 = vadd.f32 %v4897_v38, %v1317_v7  ;;  %v1394_v9 = vsel %vm1362_vm7, %v1308_v0, %v1378_v5  ;;  %v1381_v10 = vmul.f32 0.2, %v1323_v6  ;;  %vm1365_vm8 = vcmp.ge.f32.partialorder %v1323_v6, 0.0 }
 0x2d4   : > { %v4040_v11 = vpop.f32.mrf.mxu1  ;;  %4058 = vmatprep.mubr.msk.f32.mxu0 %vm1412_vm11, %v1394_v9 }
 0x2d5   : > { %vm1364_vm9 = vcmp.ge.f32.partialorder %v1318_v8, 0.0  ;;  %v1380_v13 = vmul.f32 0.2, %v1318_v8  ;;  %v1333_v14 = vadd.f32 %v4040_v11, %v4897_v38  ;;  %4059 = vmatmul.mubr.msk.f32.gmra.mxu0 %vm1412_vm11, %v1395_v12  ;;  %v1397_v18 = vsel %vm1365_vm8, %v1323_v6, %v1381_v10 }
 0x2d6   : > { %v1327_v15 = vpop.f32.mrf.mxu1 }
 0x2d7   : > { %v1328_v16 = vadd.f32 %v4897_v38, %v1327_v15  ;;  %v1396_v17 = vsel %vm1364_vm9, %v1318_v8, %v1380_v13  ;;  %v1383_v19 = vmul.f32 0.2, %v1333_v14  ;;  %vm1367_vm10 = vcmp.ge.f32.partialorder %v1333_v14, 0.0 }
 0x2d8   : > { %v4043_v20 = vpop.f32.mrf.mxu1  ;;  %4061 = vmatprep.mubr.msk.f32.mxu1 %vm1412_vm11, %v1396_v17 }
 0x2d9   : > { %vm1366_vm12 = vcmp.ge.f32.partialorder %v1328_v16, 0.0  ;;  %v1382_v21 = vmul.f32 0.2, %v1328_v16  ;;  %v1343_v22 = vadd.f32 %v4043_v20, %v4897_v38  ;;  %4062 = vmatmul.mubr.msk.f32.vlgmr.msra.gmra.mxu1 %vm1412_vm11, %v1397_v18  ;;  %v1399_v28 = vsel %vm1367_vm10, %v1333_v14, %v1383_v19 }
 0x2da   : > { %v1337_v23 = vpop.f32.mrf.mxu1  ;;  %4074 = vmatpush3.msra.mxu1 %v4891_v36 }
 0x2db   : > { %v1338_v24 = vadd.f32 %v4897_v38, %v1337_v23  ;;  %v1398_v25 = vsel %vm1366_vm12, %v1328_v16, %v1382_v21  ;;  %v1385_v26 = vmul.f32 0.2, %v1343_v22  ;;  %vm1369_vm13 = vcmp.ge.f32.partialorder %v1343_v22, 0.0 }
 0x2dc   : > { %v4046_v27 = vpop.f32.mrf.mxu1  ;;  %4064 = vmatprep.mubr.msk.f32.mxu1 %vm1412_vm11, %v1398_v25 }
 0x2dd   : > { %vm1368_vm14 = vcmp.ge.f32.partialorder %v1338_v24, 0.0  ;;  %v1384_v29 = vmul.f32 0.2, %v1338_v24  ;;  %v1353_v30 = vadd.f32 %v4046_v27, %v4897_v38  ;;  %4065 = vmatmul.mubr.msk.f32.gmra.mxu1 %vm1412_vm11, %v1399_v28  ;;  %v1401_v34 = vsel %vm1369_vm13, %v1343_v22, %v1385_v26 }
 0x2de   : > { %v1347_v31 = vpop.f32.mrf.mxu1 }
 0x2df   : > { %v1348_v32 = vadd.f32 %v4897_v38, %v1347_v31  ;;  %v1400_v33 = vsel %vm1368_vm14, %v1338_v24, %v1384_v29  ;;  %v1387_v35 = vmul.f32 0.2, %v1353_v30  ;;  %vm1371_vm15 = vcmp.ge.f32.partialorder %v1353_v30, 0.0  ;;  %v4935_v38 = vld [vmem:[%s5591_s8] ss:$0 sm:$0xff] }
 0x2e0   : > { %4067 = vmatprep.mubr.msk.f32.mxu1 %vm1412_vm11, %v1400_v33 }
 0x2e1   : > { %vm1370_vm3 = vcmp.ge.f32.partialorder %v1348_v32, 0.0  ;;  %v1386_v37 = vmul.f32 0.2, %v1348_v32  ;;  %4068 = vmatmul.mubr.msk.f32.gmra.mxu1 %vm1412_vm11, %v1401_v34  ;;  %v1403_v39 = vsel %vm1371_vm15, %v1353_v30, %v1387_v35 }
 0x2e3   : > { %v1402_v36 = vsel %vm1370_vm3, %v1348_v32, %v1386_v37 }
 0x2e4   : > { %4070 = vmatprep.mubr.msk.f32.mxu1 %vm1412_vm11, %v1402_v36 }
 0x2e5   : > { %4071 = vmatmul.mubr.msk.f32.gmra.mxu1 %vm1412_vm11, %v1403_v39 }
 0x389   : > { %v4051_v40 = vpop.f32.mrf.mxu0 }
 0x38a   : > { %v1533_v41 = vadd.f32 %v4051_v40, %v4935_v38 }
 0x38b   : > { %v1527_v42 = vpop.f32.mrf.mxu0 }
 0x38c   : > { %v1528_v43 = vadd.f32 %v4935_v38, %v1527_v42  ;;  %v1623_v44 = vmul.f32 0.2, %v1533_v41  ;;  %vm1607_vm4 = vcmp.ge.f32.partialorder %v1533_v41, 0.0 }
 0x38d   : > { %v4054_v45 = vpop.f32.mrf.mxu0 }
 0x38e   : > { %vm1606_vm5 = vcmp.ge.f32.partialorder %v1528_v43, 0.0  ;;  %v1622_v46 = vmul.f32 0.2, %v1528_v43  ;;  %v1543_v47 = vadd.f32 %v4054_v45, %v4935_v38  ;;  %v1639_v51 = vsel %vm1607_vm4, %v1533_v41, %v1623_v44 }
 0x38f   : > { %v1537_v48 = vpop.f32.mrf.mxu0 }
 0x390   : > { %v1538_v49 = vadd.f32 %v4935_v38, %v1537_v48  ;;  %v1638_v50 = vsel %vm1606_vm5, %v1528_v43, %v1622_v46  ;;  %v1625_v52 = vmul.f32 0.2, %v1543_v47  ;;  %vm1609_vm7 = vcmp.ge.f32.partialorder %v1543_v47, 0.0 }
 0x391   : > { %v4057_v53 = vpop.f32.mrf.mxu0  ;;  %4075 = vmatprep.mubr.msk.f32.mxu1 %vm1412_vm11, %v1638_v50 }
 0x392   : > { %vm1608_vm8 = vcmp.ge.f32.partialorder %v1538_v49, 0.0  ;;  %v1624_v54 = vmul.f32 0.2, %v1538_v49  ;;  %v1553_v55 = vadd.f32 %v4057_v53, %v4935_v38  ;;  %4076 = vmatmul.mubr.msk.f32.vlgmr.msra.gmra.mxu1 %vm1412_vm11, %v1639_v51  ;;  %v1641_v61 = vsel %vm1609_vm7, %v1543_v47, %v1625_v52 }
 0x393   : > { %v1547_v56 = vpop.f32.mrf.mxu0 }
 0x394   : > { %v1548_v57 = vadd.f32 %v4935_v38, %v1547_v56  ;;  %v1640_v58 = vsel %vm1608_vm8, %v1538_v49, %v1624_v54  ;;  %v1627_v59 = vmul.f32 0.2, %v1553_v55  ;;  %vm1611_vm9 = vcmp.ge.f32.partialorder %v1553_v55, 0.0 }
 0x395   : > { %v4060_v60 = vpop.f32.mrf.mxu0  ;;  %4078 = vmatprep.mubr.msk.f32.mxu1 %vm1412_vm11, %v1640_v58 }
 0x396   : > { %vm1610_vm10 = vcmp.ge.f32.partialorder %v1548_v57, 0.0  ;;  %v1626_v62 = vmul.f32 0.2, %v1548_v57  ;;  %v1563_v63 = vadd.f32 %v4060_v60, %v4935_v38  ;;  %4079 = vmatmul.mubr.msk.f32.gmra.mxu1 %vm1412_vm11, %v1641_v61  ;;  %v1643_v5 = vsel %vm1611_vm9, %v1553_v55, %v1627_v59 }
 0x397   : > { %v1557_v0 = vpop.f32.mrf.mxu0 }
 0x398   : > { %v1558_v1 = vadd.f32 %v4935_v38, %v1557_v0  ;;  %v1642_v2 = vsel %vm1610_vm10, %v1548_v57, %v1626_v62  ;;  %v1629_v3 = vmul.f32 0.2, %v1563_v63  ;;  %vm1613_vm12 = vcmp.ge.f32.partialorder %v1563_v63, 0.0 }
 0x399   : > { %v4063_v4 = vpop.f32.mrf.mxu1  ;;  %4081 = vmatprep.mubr.msk.f32.mxu1 %vm1412_vm11, %v1642_v2  ;;  %vm1848_vm10 = vcmask 523264  }
 0x39a   : > { %vm1612_vm13 = vcmp.ge.f32.partialorder %v1558_v1, 0.0  ;;  %v1628_v6 = vmul.f32 0.2, %v1558_v1  ;;  %v1573_v7 = vadd.f32 %v4063_v4, %v4935_v38  ;;  %4082 = vmatmul.mubr.msk.f32.gmra.mxu1 %vm1412_vm11, %v1643_v5  ;;  %v1645_v13 = vsel %vm1613_vm12, %v1563_v63, %v1629_v3 }
 0x39b   : > { %v1567_v8 = vpop.f32.mrf.mxu1 }
 0x39c   : > { %v1568_v9 = vadd.f32 %v4935_v38, %v1567_v8  ;;  %v1644_v10 = vsel %vm1612_vm13, %v1558_v1, %v1628_v6  ;;  %v1631_v11 = vmul.f32 0.2, %v1573_v7  ;;  %vm1615_vm14 = vcmp.ge.f32.partialorder %v1573_v7, 0.0 }
 0x39d   : > { %v4066_v12 = vpop.f32.mrf.mxu1  ;;  %4084 = vmatprep.mubr.msk.f32.mxu1 %vm1412_vm11, %v1644_v10 }
 0x39e   : > { %vm1614_vm15 = vcmp.ge.f32.partialorder %v1568_v9, 0.0  ;;  %v1630_v14 = vmul.f32 0.2, %v1568_v9  ;;  %v1583_v15 = vadd.f32 %v4066_v12, %v4935_v38  ;;  %4085 = vmatmul.mubr.msk.f32.gmra.mxu1 %vm1412_vm11, %v1645_v13  ;;  %v1647_v21 = vsel %vm1615_vm14, %v1573_v7, %v1631_v11 }
 0x39f   : > { %v1577_v16 = vpop.f32.mrf.mxu1 }
 0x3a0   : > { %v1578_v17 = vadd.f32 %v4935_v38, %v1577_v16  ;;  %v1646_v18 = vsel %vm1614_vm15, %v1568_v9, %v1630_v14  ;;  %v1633_v19 = vmul.f32 0.2, %v1583_v15  ;;  %vm1617_vm3 = vcmp.ge.f32.partialorder %v1583_v15, 0.0 }
 0x3a1   : > { %v4069_v20 = vpop.f32.mrf.mxu1  ;;  %4087 = vmatprep.mubr.msk.f32.mxu1 %vm1412_vm11, %v1646_v18 }
 0x3a2   : > { %vm1616_vm4 = vcmp.ge.f32.partialorder %v1578_v17, 0.0  ;;  %v1632_v22 = vmul.f32 0.2, %v1578_v17  ;;  %v1593_v23 = vadd.f32 %v4069_v20, %v4935_v38  ;;  %4088 = vmatmul.mubr.msk.f32.gmra.mxu1 %vm1412_vm11, %v1647_v21  ;;  %v1649_v29 = vsel %vm1617_vm3, %v1583_v15, %v1633_v19 }
 0x3a3   : > { %v1587_v24 = vpop.f32.mrf.mxu1 }
 0x3a4   : > { %v1588_v25 = vadd.f32 %v4935_v38, %v1587_v24  ;;  %v1648_v26 = vsel %vm1616_vm4, %v1578_v17, %v1632_v22  ;;  %v1635_v27 = vmul.f32 0.2, %v1593_v23  ;;  %vm1619_vm5 = vcmp.ge.f32.partialorder %v1593_v23, 0.0 }
 0x3a5   : > { %v4072_v28 = vpop.f32.mrf.mxu1  ;;  %4090 = vmatprep.mubr.msk.f32.mxu1 %vm1412_vm11, %v1648_v26 }
 0x3a6   : > { %vm1618_vm7 = vcmp.ge.f32.partialorder %v1588_v25, 0.0  ;;  %v1634_v30 = vmul.f32 0.2, %v1588_v25  ;;  %v1603_v31 = vadd.f32 %v4072_v28, %v4935_v38  ;;  %4091 = vmatmul.mubr.msk.f32.gmra.mxu1 %vm1412_vm11, %v1649_v29  ;;  %v1651_v37 = vsel %vm1619_vm5, %v1593_v23, %v1635_v27 }
 0x3a7   : > { %v1597_v32 = vpop.f32.mrf.mxu1 }
 0x3a8   : > { %v1598_v33 = vadd.f32 %v4935_v38, %v1597_v32  ;;  %v1650_v35 = vsel %vm1618_vm7, %v1588_v25, %v1634_v30  ;;  %v1637_v34 = vmul.f32 0.2, %v1603_v31  ;;  %vm1621_vm8 = vcmp.ge.f32.partialorder %v1603_v31, 0.0 }
 0x3a9   : > { %4093 = vmatprep.mubr.msk.f32.mxu1 %vm1412_vm11, %v1650_v35 }
 0x3aa   : > { %vm1620_vm9 = vcmp.ge.f32.partialorder %v1598_v33, 0.0  ;;  %v1636_v36 = vmul.f32 0.2, %v1598_v33  ;;  %4094 = vmatmul.mubr.msk.f32.gmra.mxu1 %vm1412_vm11, %v1651_v37  ;;  %v1653_v40 = vsel %vm1621_vm8, %v1603_v31, %v1637_v34 }
 0x3ac   : > { %v1652_v39 = vsel %vm1620_vm9, %v1598_v33, %v1636_v36 }
 0x3ad   : > { %4096 = vmatprep.mubr.msk.f32.mxu1 %vm1412_vm11, %v1652_v39 }
 0x3ae   : > { %4097 = vmatmul.mubr.msk.f32.gmra.mxu1 %vm1412_vm11, %v1653_v40 }
 0x452   : > { %v4077_v41 = vpop.f32.mrf.mxu1 }
 0x453   : > { %v1852_v45 = vsel %vm1848_vm10, %v4077_v41, -inf }
 0x454   : > { %v1769_v42 = vpop.f32.mrf.mxu1 }
 0x455   : > { %v1849_v38 = vsel %vm1848_vm10, %v1769_v42, -inf }
 0x456   : > { %1850 = vmax.xlane.f32.xlu0 %v1849_v38  ;;  %v4080_v43 = vpop.f32.mrf.mxu1 }
 0x457   : > { %v1858_v49 = vsel %vm1848_vm10, %v4080_v43, -inf }
 0x458   : > { %v1779_v44 = vpop.f32.mrf.mxu1 }
 0x459   : > { %v1855_v46 = vsel %vm1848_vm10, %v1779_v44, -inf }
 0x45a   : > { %1853 = vmax.xlane.f32.xlu0 %v1852_v45  ;;  %1856 = vmax.xlane.f32.xlu1 %v1855_v46  ;;  %v4083_v47 = vpop.f32.mrf.mxu1 }
 0x45b   : > { %v1864_v53 = vsel %vm1848_vm10, %v4083_v47, -inf }
 0x45c   : > { %v1789_v48 = vpop.f32.mrf.mxu1 }
 0x45d   : > { %v1861_v50 = vsel %vm1848_vm10, %v1789_v48, -inf }
 0x45e   : > { %1859 = vmax.xlane.f32.xlu1 %v1858_v49  ;;  %1862 = vmax.xlane.f32.xlu0 %v1861_v50  ;;  %v4974_v51 = vpop.f32.mrf.mxu1 }
 0x45f   : > { %v1870_v57 = vsel %vm1848_vm10, %v4974_v51, -inf }
 0x460   : > { %v1799_v52 = vpop.f32.mrf.mxu1 }
 0x461   : > { %v1867_v54 = vsel %vm1848_vm10, %v1799_v52, -inf }
 0x462   : > { %1865 = vmax.xlane.f32.xlu1 %v1864_v53  ;;  %1868 = vmax.xlane.f32.xlu0 %v1867_v54  ;;  %v4978_v55 = vpop.f32.mrf.mxu1 }
 0x463   : > { %v1876_v61 = vsel %vm1848_vm10, %v4978_v55, -inf }
 0x464   : > { %v1809_v56 = vpop.f32.mrf.mxu1 }
 0x465   : > { %v1873_v58 = vsel %vm1848_vm10, %v1809_v56, -inf }
 0x466   : > { %1871 = vmax.xlane.f32.xlu1 %v1870_v57  ;;  %1874 = vmax.xlane.f32.xlu0 %v1873_v58  ;;  %v4983_v59 = vpop.f32.mrf.mxu1 }
 0x467   : > { %v1882_v1 = vsel %vm1848_vm10, %v4983_v59, -inf }
 0x468   : > { %v4985_v60 = vpop.f32.mrf.mxu1 }
 0x469   : > { %v1879_v62 = vsel %vm1848_vm10, %v4985_v60, -inf }
 0x46a   : > { %1877 = vmax.xlane.f32.xlu1 %v1876_v61  ;;  %1880 = vmax.xlane.f32.xlu0 %v1879_v62  ;;  %v4991_v63 = vpop.f32.mrf.mxu1 }
 0x46b   : > { %v1888_v5 = vsel %vm1848_vm10, %v4991_v63, -inf }
 0x46c   : > { %v4993_v0 = vpop.f32.mrf.mxu1 }
 0x46d   : > { %v1885_v2 = vsel %vm1848_vm10, %v4993_v0, -inf }
 0x46e   : > { %1883 = vmax.xlane.f32.xlu1 %v1882_v1  ;;  %1886 = vmax.xlane.f32.xlu0 %v1885_v2  ;;  %v4999_v3 = vpop.f32.mrf.mxu1 }
 0x46f   : > { %v1894_v7 = vsel %vm1848_vm10, %v4999_v3, -inf }
 0x470   : > { %v5001_v4 = vpop.f32.mrf.mxu1 }
 0x471   : > { %v1891_v6 = vsel %vm1848_vm10, %v5001_v4, -inf }
 0x472   : > { %1889 = vmax.xlane.f32.xlu1 %v1888_v5  ;;  %1892 = vmax.xlane.f32.xlu0 %v1891_v6 }
 0x476   : > { %1895 = vmax.xlane.f32.xlu1 %v1894_v7 }
 0x4df   : > { %v1851_v8 = vpop.xlane.xlu0 %1850 }
 0x4e0   : > { %v1897_v9 = vsub.f32 %v1769_v42, %v1851_v8 }
 0x4e2   : > { %v1913_v10 = vmul.f32 1.442695, %v1897_v9 }
 0x4e3   : > { %v1854_v11 = vpop.xlane.xlu0 %1853  ;;  %v1857_v12 = vpop.xlane.xlu1 %1856 }
 0x4e4   : > { %4295 = vpow2.f32 %v1913_v10  ;;  %v1898_v13 = vsub.f32 %v4077_v41, %v1854_v11  ;;  %v1899_v14 = vsub.f32 %v1779_v44, %v1857_v12 }
 0x4e6   : > { %v1915_v15 = vmul.f32 1.442695, %v1898_v13  ;;  %v1917_v16 = vmul.f32 1.442695, %v1899_v14 }
 0x4e7   : > { %v1860_v17 = vpop.xlane.xlu1 %1859  ;;  %v1863_v18 = vpop.xlane.xlu0 %1862 }
 0x4e8   : > { %4297 = vpow2.f32 %v1915_v15  ;;  %v1900_v19 = vsub.f32 %v4080_v43, %v1860_v17  ;;  %v1901_v20 = vsub.f32 %v1789_v48, %v1863_v18 }
 0x4e9   : > { %4299 = vpow2.f32 %v1917_v16 }
 0x4ea   : > { %v1919_v21 = vmul.f32 1.442695, %v1900_v19  ;;  %v1921_v22 = vmul.f32 1.442695, %v1901_v20 }
 0x4eb   : > { %v1866_v23 = vpop.xlane.xlu1 %1865  ;;  %v1869_v24 = vpop.xlane.xlu0 %1868 }
 0x4ec   : > { %4301 = vpow2.f32 %v1919_v21  ;;  %v1902_v25 = vsub.f32 %v4083_v47, %v1866_v23  ;;  %v1903_v26 = vsub.f32 %v1799_v52, %v1869_v24 }
 0x4ed   : > { %4303 = vpow2.f32 %v1921_v22 }
 0x4ee   : > { %v1923_v27 = vmul.f32 1.442695, %v1902_v25  ;;  %v1925_v28 = vmul.f32 1.442695, %v1903_v26 }
 0x4ef   : > { %v1872_v29 = vpop.xlane.xlu1 %1871  ;;  %v1875_v30 = vpop.xlane.xlu0 %1874 }
 0x4f0   : > { %4305 = vpow2.f32 %v1923_v27  ;;  %v1904_v31 = vsub.f32 %v4974_v51, %v1872_v29  ;;  %v1905_v32 = vsub.f32 %v1809_v56, %v1875_v30 }
 0x4f1   : > { %v5010_v33 = vpop.eup %4295  ;;  %4307 = vpow2.f32 %v1925_v28 }
 0x4f2   : > { %v1927_v35 = vmul.f32 1.442695, %v1904_v31  ;;  %v1929_v34 = vmul.f32 1.442695, %v1905_v32  ;;  %v1945_v37 = vsel %vm1848_vm10, %v5010_v33, 0.0 }
 0x4f3   : > { %v1878_v36 = vpop.xlane.xlu1 %1877  ;;  %v1881_v39 = vpop.xlane.xlu0 %1880  ;;  %1946 = vadd.xlane.f32.xlu0 %v1945_v37 }
 0x4f4   : > { %4309 = vpow2.f32 %v1927_v35  ;;  %v1906_v40 = vsub.f32 %v4978_v55, %v1878_v36  ;;  %v1907_v41 = vsub.f32 %v4985_v60, %v1881_v39 }
 0x4f5   : > { %v5016_v42 = vpop.eup %4297  ;;  %4311 = vpow2.f32 %v1929_v34 }
 0x4f6   : > { %v5018_v38 = vpop.eup %4299  ;;  %v1931_v43 = vmul.f32 1.442695, %v1906_v40  ;;  %v1933_v44 = vmul.f32 1.442695, %v1907_v41  ;;  %v1948_v45 = vsel %vm1848_vm10, %v5016_v42, 0.0 }
 0x4f7   : > { %v1884_v46 = vpop.xlane.xlu1 %1883  ;;  %v1887_v47 = vpop.xlane.xlu0 %1886  ;;  %1949 = vadd.xlane.f32.xlu1 %v1948_v45  ;;  %v1951_v48 = vsel %vm1848_vm10, %v5018_v38, 0.0 }
 0x4f8   : > { %4313 = vpow2.f32 %v1931_v43  ;;  %v1908_v49 = vsub.f32 %v4983_v59, %v1884_v46  ;;  %v1909_v50 = vsub.f32 %v4993_v0, %v1887_v47  ;;  %1952 = vadd.xlane.f32.xlu0 %v1951_v48 }
 0x4f9   : > { %v5026_v51 = vpop.eup %4301  ;;  %4315 = vpow2.f32 %v1933_v44 }
 0x4fa   : > { %v5028_v52 = vpop.eup %4303  ;;  %v1935_v53 = vmul.f32 1.442695, %v1908_v49  ;;  %v1937_v54 = vmul.f32 1.442695, %v1909_v50  ;;  %v1954_v55 = vsel %vm1848_vm10, %v5026_v51, 0.0 }
 0x4fb   : > { %v1890_v56 = vpop.xlane.xlu1 %1889  ;;  %1955 = vadd.xlane.f32.xlu1 %v1954_v55  ;;  %v1957_v57 = vsel %vm1848_vm10, %v5028_v52, 0.0  ;;  %v1893_v58 = vpop.xlane.xlu0 %1892 }
 0x4fc   : > { %4317 = vpow2.f32 %v1935_v53  ;;  %v1910_v59 = vsub.f32 %v4991_v63, %v1890_v56  ;;  %1958 = vadd.xlane.f32.xlu0 %v1957_v57  ;;  %v1911_v60 = vsub.f32 %v5001_v4, %v1893_v58 }
 0x4fd   : > { %v5036_v61 = vpop.eup %4305  ;;  %4319 = vpow2.f32 %v1937_v54 }
 0x4fe   : > { %v5038_v62 = vpop.eup %4307  ;;  %v1939_v0 = vmul.f32 1.442695, %v1910_v59  ;;  %v1941_v1 = vmul.f32 1.442695, %v1911_v60  ;;  %v1960_v2 = vsel %vm1848_vm10, %v5036_v61, 0.0 }
 0x4ff   : > { %1961 = vadd.xlane.f32.xlu1 %v1960_v2  ;;  %v1896_v5 = vpop.xlane.xlu1 %1895  ;;  %v1963_v6 = vsel %vm1848_vm10, %v5038_v62, 0.0 }
 0x500   : > { %4321 = vpow2.f32 %v1939_v0  ;;  %v1912_v63 = vsub.f32 %v4999_v3, %v1896_v5  ;;  %1964 = vadd.xlane.f32.xlu0 %v1963_v6 }
 0x501   : > { %v5045_v4 = vpop.eup %4309  ;;  %4323 = vpow2.f32 %v1941_v1 }
 0x502   : > { %v5047_v7 = vpop.eup %4311  ;;  %v1943_v8 = vmul.f32 1.442695, %v1912_v63  ;;  %v1966_v9 = vsel %vm1848_vm10, %v5045_v4, 0.0 }
 0x503   : > { %1967 = vadd.xlane.f32.xlu1 %v1966_v9  ;;  %v1969_v10 = vsel %vm1848_vm10, %v5047_v7, 0.0 }
 0x504   : > { %4325 = vpow2.f32 %v1943_v8  ;;  %1970 = vadd.xlane.f32.xlu0 %v1969_v10 }
 0x505   : > { %v5053_v11 = vpop.eup %4313 }
 0x506   : > { %v5055_v12 = vpop.eup %4315  ;;  %v1972_v3 = vsel %vm1848_vm10, %v5053_v11, 0.0 }
 0x507   : > { %1973 = vadd.xlane.f32.xlu1 %v1972_v3  ;;  %v1975_v13 = vsel %vm1848_vm10, %v5055_v12, 0.0 }
 0x508   : > { %1976 = vadd.xlane.f32.xlu0 %v1975_v13 }
 0x509   : > { %v5061_v14 = vpop.eup %4317 }
 0x50a   : > { %v5063_v15 = vpop.eup %4319  ;;  %v1978_v16 = vsel %vm1848_vm10, %v5061_v14, 0.0 }
 0x50b   : > { %1979 = vadd.xlane.f32.xlu1 %v1978_v16  ;;  %v1981_v17 = vsel %vm1848_vm10, %v5063_v15, 0.0 }
 0x50c   : > { %1982 = vadd.xlane.f32.xlu0 %v1981_v17 }
 0x50d   : > { %v5069_v18 = vpop.eup %4321 }
 0x50e   : > { %v5071_v19 = vpop.eup %4323  ;;  %v1984_v20 = vsel %vm1848_vm10, %v5069_v18, 0.0 }
 0x50f   : > { %1985 = vadd.xlane.f32.xlu1 %v1984_v20  ;;  %v1987_v21 = vsel %vm1848_vm10, %v5071_v19, 0.0 }
 0x510   : > { %1988 = vadd.xlane.f32.xlu0 %v1987_v21 }
 0x511   : > { %v5077_v22 = vpop.eup %4325 }
 0x512   : > { %v1990_v23 = vsel %vm1848_vm10, %v5077_v22, 0.0 }
 0x513   : > { %1991 = vadd.xlane.f32.xlu1 %v1990_v23 }
 0x57c   : > { %v1947_v24 = vpop.xlane.xlu0 %1946 }
 0x57d   : > { %4327 = vrcp.f32 %v1947_v24 }
 0x580   : > { %v1950_v25 = vpop.xlane.xlu1 %1949 }
 0x581   : > { %4329 = vrcp.f32 %v1950_v25  ;;  %v1953_v26 = vpop.xlane.xlu0 %1952 }
 0x582   : > { %4331 = vrcp.f32 %v1953_v26 }
 0x584   : > { %v1956_v27 = vpop.xlane.xlu1 %1955 }
 0x585   : > { %4333 = vrcp.f32 %v1956_v27  ;;  %v1959_v28 = vpop.xlane.xlu0 %1958 }
 0x586   : > { %4335 = vrcp.f32 %v1959_v28 }
 0x588   : > { %v1962_v29 = vpop.xlane.xlu1 %1961 }
 0x589   : > { %4337 = vrcp.f32 %v1962_v29  ;;  %v1965_v30 = vpop.xlane.xlu0 %1964 }
 0x58a   : > { %v4328_v31 = vpop.eup %4327  ;;  %4339 = vrcp.f32 %v1965_v30 }
 0x58b   : > { %v2009_v32 = vmul.f32 %v4328_v31, %v5010_v33 }
 0x58c   : > { %v1968_v35 = vpop.xlane.xlu1 %1967 }
 0x58d   : > { %4341 = vrcp.f32 %v1968_v35  ;;  %v1971_v34 = vpop.xlane.xlu0 %1970  ;;  %v3638_v37 = vadd.f32 -0.0025, %v2009_v32 }
 0x58e   : > { %v4330_v36 = vpop.eup %4329  ;;  %4343 = vrcp.f32 %v1971_v34 }
 0x58f   : > { %v4332_v39 = vpop.eup %4331  ;;  %v2073_v40 = vand.u32 2147483647, %v3638_v37  ;;  %v5083_v41 = vmul.f32 %v4330_v36, %v5016_v42  ;;  %v2041_v63 = vmax.f32 %v3638_v37, 0.0 }
 0x590   : > { %v1974_v43 = vpop.xlane.xlu1 %1973  ;;  %v5086_v44 = vmul.f32 %v4332_v39, %v5018_v38 }
 0x591   : > { %4345 = vrcp.f32 %v1974_v43  ;;  %v1977_v45 = vpop.xlane.xlu0 %1976  ;;  %v2089_v46 = vadd.f32 1e-12, %v2073_v40  ;;  %v5089_v33 = vadd.f32 -0.0025, %v5083_v41  ;;  %v2057_v23 = vmul.f32 %v2041_v63, %v2009_v32 }
 0x592   : > { %v4334_v47 = vpop.eup %4333  ;;  %4347 = vrcp.f32 %v1977_v45  ;;  %v5092_v48 = vadd.f32 -0.0025, %v5086_v44 }
 0x593   : > { %v4336_v49 = vpop.eup %4335  ;;  %4349 = vrcp.f32 %v2089_v46  ;;  %v2074_v42 = vand.u32 2147483647, %v5089_v33  ;;  %v5096_v50 = vmul.f32 %v4334_v47, %v5026_v51  ;;  %v2042_v24 = vmax.f32 %v5089_v33, 0.0 }
 0x594   : > { %v1980_v38 = vpop.xlane.xlu1 %1979  ;;  %v2075_v53 = vand.u32 2147483647, %v5092_v48  ;;  %v5100_v54 = vmul.f32 %v4336_v49, %v5028_v52  ;;  %v2043_v28 = vmax.f32 %v5092_v48, 0.0 }
 0x595   : > { %4351 = vrcp.f32 %v1980_v38  ;;  %v1983_v55 = vpop.xlane.xlu0 %1982  ;;  %v2090_v56 = vadd.f32 1e-12, %v2074_v42  ;;  %v3641_v57 = vadd.f32 -0.0025, %v5096_v50  ;;  %v2058_v46 = vmul.f32 %v2042_v24, %v5083_v41 }
 0x596   : > { %v4338_v58 = vpop.eup %4337  ;;  %4353 = vrcp.f32 %v1983_v55  ;;  %v2091_v59 = vadd.f32 1e-12, %v2075_v53  ;;  %v3642_v60 = vadd.f32 -0.0025, %v5100_v54 }
 0x597   : > { %v4340_v0 = vpop.eup %4339  ;;  %4355 = vrcp.f32 %v2090_v56  ;;  %v2076_v51 = vand.u32 2147483647, %v3641_v57  ;;  %v5105_v1 = vmul.f32 %v4338_v58, %v5036_v61  ;;  %v2044_v31 = vmax.f32 %v3641_v57, 0.0 }
 0x598   : > { %v1986_v2 = vpop.xlane.xlu1 %1985  ;;  %4357 = vrcp.f32 %v2091_v59  ;;  %v2077_v52 = vand.u32 2147483647, %v3642_v60  ;;  %v5108_v5 = vmul.f32 %v4340_v0, %v5038_v62  ;;  %v2045_v34 = vmax.f32 %v3642_v60, 0.0 }
 0x599   : > { %4359 = vrcp.f32 %v1986_v2  ;;  %v1989_v6 = vpop.xlane.xlu0 %1988  ;;  %v2092_v8 = vadd.f32 1e-12, %v2076_v51  ;;  %v5111_v9 = vadd.f32 -0.0025, %v5105_v1 }
 0x59a   : > { %v4342_v10 = vpop.eup %4341  ;;  %4361 = vrcp.f32 %v1989_v6  ;;  %v2093_v3 = vadd.f32 1e-12, %v2077_v52  ;;  %v5114_v13 = vadd.f32 -0.0025, %v5108_v5  ;;  %v2061_v53 = vmul.f32 %v2045_v34, %v5100_v54 }
 0x59b   : > { %v4344_v61 = vpop.eup %4343  ;;  %4363 = vrcp.f32 %v2092_v8  ;;  %v2078_v16 = vand.u32 2147483647, %v5111_v9  ;;  %v5118_v62 = vmul.f32 %v4342_v10, %v5045_v4  ;;  %v2046_v58 = vmax.f32 %v5111_v9, 0.0 }
 0x59c   : > { %v1992_v17 = vpop.xlane.xlu1 %1991  ;;  %4365 = vrcp.f32 %v2093_v3  ;;  %v2079_v20 = vand.u32 2147483647, %v5114_v13  ;;  %v5122_v21 = vmul.f32 %v4344_v61, %v5047_v7  ;;  %v2047_v54 = vmax.f32 %v5114_v13, 0.0 }
 0x59d   : > { %v2094_v25 = vadd.f32 1e-12, %v2078_v16  ;;  %v5126_v26 = vadd.f32 -0.0025, %v5118_v62  ;;  %4367 = vrcp.f32 %v1992_v17 }
 0x59e   : > { %v4346_v27 = vpop.eup %4345  ;;  %v2095_v4 = vadd.f32 1e-12, %v2079_v20  ;;  %v5130_v29 = vadd.f32 -0.0025, %v5122_v21  ;;  %v2062_v20 = vmul.f32 %v2046_v58, %v5105_v1 }
 0x59f   : > { %v4348_v30 = vpop.eup %4347  ;;  %4369 = vrcp.f32 %v2094_v25  ;;  %v2080_v7 = vand.u32 2147483647, %v5126_v26  ;;  %v5134_v32 = vmul.f32 %v4346_v27, %v5053_v11  ;;  %v2059_v11 = vmul.f32 %v2043_v28, %v5086_v44 }
 0x5a0   : > { %v4350_v35 = vpop.eup %4349  ;;  %4371 = vrcp.f32 %v2095_v4  ;;  %v2081_v37 = vand.u32 2147483647, %v5130_v29  ;;  %v5138_v36 = vmul.f32 %v4348_v30, %v5055_v12  ;;  %v2060_v12 = vmul.f32 %v2044_v31, %v5096_v50 }
 0x5a1   : > { %v5140_v39 = vmul.f32 %v4350_v35, %v2057_v23  ;;  %v2096_v40 = vadd.f32 1e-12, %v2080_v7  ;;  %v5143_v43 = vadd.f32 -0.0025, %v5134_v32  ;;  %v2048_v9 = vmax.f32 %v5126_v26, 0.0 }
 0x5a2   : > { %v4352_v45 = vpop.eup %4351  ;;  %v2097_v33 = vadd.f32 1e-12, %v2081_v37  ;;  %v5148_v47 = vadd.f32 -0.0025, %v5138_v36  ;;  %v2063_v26 = vmul.f32 %v2047_v54, %v5108_v5  ;;  %v2049_v27 = vmax.f32 %v5130_v29, 0.0 }
 0x5a3   : > { %v4354_v48 = vpop.eup %4353  ;;  %v2137_v49 = vand.u32 2147483647, %v5140_v39  ;;  %4373 = vrcp.f32 %v2096_v40  ;;  %v2082_v42 = vand.u32 2147483647, %v5143_v43  ;;  %v5156_v44 = vmul.f32 %v4352_v45, %v5061_v14 }
 0x5a4   : > { %v4356_v38 = vpop.eup %4355  ;;  %4375 = vrcp.f32 %v2097_v33  ;;  %v2083_v41 = vand.u32 2147483647, %v5148_v47  ;;  %v5170_v52 = vmul.f32 %v4354_v48, %v5063_v15  ;;  %v2064_v5 = vmul.f32 %v2048_v9, %v5118_v62 }
 0x5a5   : > { %v4358_v55 = vpop.eup %4357  ;;  %v2153_v56 = vsel %vm1848_vm10, %v2137_v49, 0.0  ;;  %v5159_v57 = vmul.f32 %v4356_v38, %v2058_v46  ;;  %v2098_v50 = vadd.f32 1e-12, %v2082_v42  ;;  %v5166_v51 = vadd.f32 -0.0025, %v5156_v44 }
 0x5a6   : > { %v4360_v59 = vpop.eup %4359  ;;  %2154 = vadd.xlane.f32.xlu0 %v2153_v56  ;;  %v5162_v60 = vmul.f32 %v4358_v55, %v2059_v11  ;;  %v2099_v0 = vadd.f32 1e-12, %v2083_v41  ;;  %v5182_v16 = vadd.f32 -0.0025, %v5170_v52  ;;  %v2050_v45 = vmax.f32 %v5143_v43, 0.0 }
 0x5a7   : > { %v4362_v14 = vpop.eup %4361  ;;  %v2138_v2 = vand.u32 2147483647, %v5159_v57  ;;  %4377 = vrcp.f32 %v2098_v50  ;;  %v5173_v6 = vmul.f32 %v4360_v59, %v5069_v18  ;;  %v2084_v10 = vand.u32 2147483647, %v5166_v51 }
 0x5a8   : > { %v4364_v63 = vpop.eup %4363  ;;  %v2139_v8 = vand.u32 2147483647, %v5162_v60  ;;  %4379 = vrcp.f32 %v2099_v0  ;;  %v2085_v28 = vand.u32 2147483647, %v5182_v16  ;;  %v5198_v7 = vmul.f32 %v4362_v14, %v5071_v19 }
 0x5a9   : > { %v4366_v3 = vpop.eup %4365  ;;  %v2156_v13 = vsel %vm1848_vm10, %v2138_v2, 0.0  ;;  %v5179_v61 = vmul.f32 %v4364_v63, %v2060_v12  ;;  %v5185_v15 = vadd.f32 -0.0025, %v5173_v6  ;;  %v2100_v23 = vadd.f32 1e-12, %v2084_v10 }
 0x5aa   : > { %2157 = vadd.xlane.f32.xlu1 %v2156_v13  ;;  %v2159_v18 = vsel %vm1848_vm10, %v2139_v8, 0.0  ;;  %v5188_v17 = vmul.f32 %v4366_v3, %v2061_v53  ;;  %v4368_v24 = vpop.eup %4367  ;;  %v2101_v37 = vadd.f32 1e-12, %v2085_v28  ;;  %v5210_v11 = vadd.f32 -0.0025, %v5198_v7 }
 0x5ab   : > { %2160 = vadd.xlane.f32.xlu0 %v2159_v18  ;;  %v2140_v25 = vand.u32 2147483647, %v5179_v61  ;;  %4381 = vrcp.f32 %v2100_v23  ;;  %v2086_v31 = vand.u32 2147483647, %v5185_v15  ;;  %v5213_v33 = vmul.f32 %v4368_v24, %v5077_v22 }
 0x5ac   : > { %v4370_v4 = vpop.eup %4369  ;;  %v2141_v30 = vand.u32 2147483647, %v5188_v17  ;;  %4383 = vrcp.f32 %v2101_v37  ;;  %v2065_v49 = vmul.f32 %v2049_v27, %v5122_v21  ;;  %v2051_v12 = vmax.f32 %v5148_v47, 0.0 }
 0x5ad   : > { %v4372_v1 = vpop.eup %4371  ;;  %v2162_v35 = vsel %vm1848_vm10, %v2140_v25, 0.0  ;;  %v5201_v34 = vmul.f32 %v4370_v4, %v2062_v20  ;;  %v2102_v46 = vadd.f32 1e-12, %v2086_v31  ;;  %v2087_v53 = vand.u32 2147483647, %v5210_v11 }
 0x5ae   : > { %2163 = vadd.xlane.f32.xlu1 %v2162_v35  ;;  %v2165_v29 = vsel %vm1848_vm10, %v2141_v30, 0.0  ;;  %v5205_v40 = vmul.f32 %v4372_v1, %v2063_v26  ;;  %v5226_v55 = vadd.f32 -0.0025, %v5213_v33  ;;  %v2066_v47 = vmul.f32 %v2050_v45, %v5134_v32  ;;  %v2269_v45 = vld [vmem:[%s5593_s10 + $0x20] sm:$0xff] }
 0x5af   : > { %2166 = vadd.xlane.f32.xlu0 %v2165_v29  ;;  %v2142_v19 = vand.u32 2147483647, %v5201_v34  ;;  %4385 = vrcp.f32 %v2102_v46  ;;  %v2103_v56 = vadd.f32 1e-12, %v2087_v53  ;;  %v2067_v59 = vmul.f32 %v2051_v12, %v5138_v36  ;;  %v2267_v12 = vld [vmem:[%s5593_s10 + $0x10] sm:$0xff] }
 0x5b0   : > { %v4374_v62 = vpop.eup %4373  ;;  %v2143_v48 = vand.u32 2147483647, %v5205_v40  ;;  %v2052_v54 = vmax.f32 %v5166_v51, 0.0  ;;  %v2088_v0 = vand.u32 2147483647, %v5226_v55  ;;  %v2053_v36 = vmax.f32 %v5182_v16, 0.0 }
 0x5b1   : > { %v4376_v43 = vpop.eup %4375  ;;  %v2168_v42 = vsel %vm1848_vm10, %v2142_v19, 0.0  ;;  %v5219_v38 = vmul.f32 %v4374_v62, %v2064_v5  ;;  %4387 = vrcp.f32 %v2103_v56  ;;  %v2054_v13 = vmax.f32 %v5185_v15, 0.0  ;;  %v2272_v16 = vld [vmem:[%s5593_s10 + $0x38] sm:$0xff] }
 0x5b2   : > { %2169 = vadd.xlane.f32.xlu1 %v2168_v42  ;;  %v2171_v41 = vsel %vm1848_vm10, %v2143_v48, 0.0  ;;  %v5223_v22 = vmul.f32 %v4376_v43, %v2065_v49  ;;  %v2104_v9 = vadd.f32 1e-12, %v2088_v0  ;;  %v2068_v3 = vmul.f32 %v2052_v54, %v5156_v44  ;;  %4099 = vmatprep.subr.mxu0 %v2272_v16  ;;  %v2268_v62 = vld [vmem:[%s5593_s10 + $0x18] sm:$0xff]  ;;  %v2266_v42 = vld [vmem:[%s5593_s10 + $0x8] sm:$0xff] }
 0x5b3   : > { %2172 = vadd.xlane.f32.xlu0 %v2171_v41  ;;  %v2144_v21 = vand.u32 2147483647, %v5219_v38  ;;  %v2069_v25 = vmul.f32 %v2053_v36, %v5170_v52  ;;  %v2070_v15 = vmul.f32 %v2054_v13, %v5173_v6  ;;  %v2055_v4 = vmax.f32 %v5210_v11, 0.0  ;;  %4100 = vmatpush3.msra.mxu0 %v2272_v16  ;;  %v2271_v52 = vld [vmem:[%s5593_s10 + $0x30] sm:$0xff]  ;;  %v2270_v6 = vld [vmem:[%s5593_s10 + $0x28] sm:$0xff] }
 0x5b4   : > { %v4378_v58 = vpop.eup %4377  ;;  %v2145_v50 = vand.u32 2147483647, %v5223_v22  ;;  %4389 = vrcp.f32 %v2104_v9  ;;  %4101 = vmatprep.subr.mxu0 %v2271_v52  ;;  %v2056_v5 = vmax.f32 %v5226_v55, 0.0 }
 0x5b5   : > { %v4380_v14 = vpop.eup %4379  ;;  %v2174_v2 = vsel %vm1848_vm10, %v2144_v21, 0.0  ;;  %v5235_v63 = vmul.f32 %v4378_v58, %v2066_v47  ;;  %4102 = vmatpush3.msra.mxu0 %v2271_v52  ;;  %v2071_v29 = vmul.f32 %v2055_v4, %v5198_v7  ;;  %v2466_v21 = vld [vmem:[%s5594_s11] sm:$0xff] }
 0x5b6   : > { %2175 = vadd.xlane.f32.xlu1 %v2174_v2  ;;  %v2177_v8 = vsel %vm1848_vm10, %v2145_v50, 0.0  ;;  %v5238_v32 = vmul.f32 %v4380_v14, %v2067_v59  ;;  %4103 = vmatprep.subr.mxu0 %v2270_v6  ;;  %v2072_v7 = vmul.f32 %v2056_v5, %v5213_v33  ;;  %v2265_v33 = vld [vmem:[%s5593_s10] sm:$0xff] }
 0x5b7   : > { %2178 = vadd.xlane.f32.xlu0 %v2177_v8  ;;  %v2146_v10 = vand.u32 2147483647, %v5235_v63  ;;  %4104 = vmatpush3.msra.mxu0 %v2270_v6 }
 0x5b8   : > { %v2147_v51 = vand.u32 2147483647, %v5238_v32  ;;  %v4382_v18 = vpop.eup %4381  ;;  %4105 = vmatprep.subr.mxu0 %v2269_v45  ;;  %4139 = vmatprep.subr.mxu1 %v2466_v21 }
 0x5b9   : > { %v2180_v20 = vsel %vm1848_vm10, %v2146_v10, 0.0  ;;  %v5247_v24 = vmul.f32 %v4382_v18, %v2068_v3  ;;  %v4384_v26 = vpop.eup %4383  ;;  %4106 = vmatpush3.msra.mxu0 %v2269_v45  ;;  %4140 = vmatpush3.msra.mxu1 %v2466_v21 }
 0x5ba   : > { %2181 = vadd.xlane.f32.xlu1 %v2180_v20  ;;  %v2183_v23 = vsel %vm1848_vm10, %v2147_v51, 0.0  ;;  %v5255_v28 = vmul.f32 %v4384_v26, %v2069_v25  ;;  %4107 = vmatprep.subr.mxu0 %v2268_v62 }
 0x5bb   : > { %2184 = vadd.xlane.f32.xlu0 %v2183_v23  ;;  %v2148_v44 = vand.u32 2147483647, %v5247_v24  ;;  %4108 = vmatpush3.msra.mxu0 %v2268_v62 }
 0x5bc   : > { %v4386_v27 = vpop.eup %4385  ;;  %v2149_v1 = vand.u32 2147483647, %v5255_v28  ;;  %4109 = vmatprep.subr.mxu0 %v2267_v12 }
 0x5bd   : > { %v2186_v30 = vsel %vm1848_vm10, %v2148_v44, 0.0  ;;  %v5262_v31 = vmul.f32 %v4386_v27, %v2070_v15  ;;  %4110 = vmatpush3.msra.mxu0 %v2267_v12 }
 0x5be   : > { %2187 = vadd.xlane.f32.xlu1 %v2186_v30  ;;  %v2189_v37 = vsel %vm1848_vm10, %v2149_v1, 0.0  ;;  %v4388_v46 = vpop.eup %4387  ;;  %4111 = vmatprep.subr.mxu0 %v2266_v42 }
 0x5bf   : > { %v2150_v35 = vand.u32 2147483647, %v5262_v31  ;;  %2190 = vadd.xlane.f32.xlu0 %v2189_v37  ;;  %v5276_v11 = vmul.f32 %v4388_v46, %v2071_v29  ;;  %4112 = vmatpush3.msra.mxu0 %v2266_v42 }
 0x5c0   : > { %4113 = vmatprep.subr.mxu0 %v2265_v33 }
 0x5c1   : > { %v2192_v19 = vsel %vm1848_vm10, %v2150_v35, 0.0  ;;  %v4390_v48 = vpop.eup %4389  ;;  %v2151_v49 = vand.u32 2147483647, %v5276_v11  ;;  %4114 = vmatpush3.msra.mxu0 %v2265_v33 }
 0x5c2   : > { %2193 = vadd.xlane.f32.xlu1 %v2192_v19  ;;  %v5286_v43 = vmul.f32 %v4390_v48, %v2072_v7 }
 0x5c3   : > { %v2195_v53 = vsel %vm1848_vm10, %v2151_v49, 0.0 }
 0x5c4   : > { %2196 = vadd.xlane.f32.xlu0 %v2195_v53  ;;  %v2152_v41 = vand.u32 2147483647, %v5286_v43 }
 0x5c6   : > { %v2198_v55 = vsel %vm1848_vm10, %v2152_v41, 0.0 }
 0x5c7   : > { %2199 = vadd.xlane.f32.xlu1 %v2198_v55 }
 0x62f   : > { %v2155_v47 = vpop.xlane.xlu0 %2154 }
 0x630   : > { %v2201_v56 = vmax.f32 %v2155_v47, 1e-12 }
 0x632   : > { %4391 = vrcp.f32 %v2201_v56 }
 0x633   : > { %v2158_v58 = vpop.xlane.xlu1 %2157 }
 0x634   : > { %v2202_v50 = vmax.f32 %v2158_v58, 1e-12  ;;  %v2161_v59 = vpop.xlane.xlu0 %2160 }
 0x635   : > { %v2203_v54 = vmax.f32 %v2161_v59, 1e-12 }
 0x636   : > { %4393 = vrcp.f32 %v2202_v50 }
 0x637   : > { %4395 = vrcp.f32 %v2203_v54  ;;  %v2164_v0 = vpop.xlane.xlu1 %2163 }
 0x638   : > { %v2204_v14 = vmax.f32 %v2164_v0, 1e-12  ;;  %v2167_v2 = vpop.xlane.xlu0 %2166 }
 0x639   : > { %v2205_v8 = vmax.f32 %v2167_v2, 1e-12 }
 0x63a   : > { %4397 = vrcp.f32 %v2204_v14 }
 0x63b   : > { %4399 = vrcp.f32 %v2205_v8  ;;  %v2170_v9 = vpop.xlane.xlu1 %2169 }
 0x63c   : > { %v2206_v10 = vmax.f32 %v2170_v9, 1e-12  ;;  %v2173_v36 = vpop.xlane.xlu0 %2172 }
 0x63d   : > { %v2207_v51 = vmax.f32 %v2173_v36, 1e-12 }
 0x63e   : > { %4401 = vrcp.f32 %v2206_v10 }
 0x63f   : > { %v4392_v3 = vpop.eup %4391  ;;  %4403 = vrcp.f32 %v2207_v51  ;;  %v2176_v13 = vpop.xlane.xlu1 %2175 }
 0x640   : > { %v2208_v18 = vmax.f32 %v2176_v13, 1e-12  ;;  %v2179_v20 = vpop.xlane.xlu0 %2178  ;;  %v2218_v23 = vmul.f32 %v4392_v3, %v5140_v39 }
 0x641   : > { %v2209_v25 = vmax.f32 %v2179_v20, 1e-12  ;;  %v2964_v20 = vld [vmem:[%s5598_s15] sm:$0xf] }
 0x642   : > { %4405 = vrcp.f32 %v2208_v18  ;;  %2249 = vst.msk [vmem:[%s5304_s16] sm:$0xff] %vm1848_vm10, %v2218_v23  ;;  %4115 = vmatprep.mubr.msk.f32.mxu0 %vm1848_vm10, %v2218_v23  ;;  %4191 = vmatprep.subr.msk.mxu1 %vm1207_vm1, %v2964_v20  ;;  %v5397_v23 = vld [vmem:[%s5595_s12] ss:$0 sm:$0xff] }
 0x643   : > { %v4394_v16 = vpop.eup %4393  ;;  %4407 = vrcp.f32 %v2209_v25  ;;  %v2182_v26 = vpop.xlane.xlu1 %2181 }
 0x644   : > { %v4396_v44 = vpop.eup %4395  ;;  %v2220_v15 = vmul.f32 %v4394_v16, %v5159_v57  ;;  %v2210_v27 = vmax.f32 %v2182_v26, 1e-12  ;;  %v2185_v4 = vpop.xlane.xlu0 %2184 }
 0x645   : > { %v2211_v52 = vmax.f32 %v2185_v4, 1e-12  ;;  %v2222_v30 = vmul.f32 %v4396_v44, %v5162_v60 }
 0x646   : > { %2250 = vst.msk [vmem:[%s5304_s16 + $0x8] sm:$0xff] %vm1848_vm10, %v2220_v15  ;;  %4409 = vrcp.f32 %v2210_v27  ;;  %4116 = vmatmul.mubr.msk.f32.vlgmr.msra.gmra.mxu0 %vm1848_vm10, %v2220_v15 }
 0x647   : > { %v4398_v39 = vpop.eup %4397  ;;  %4411 = vrcp.f32 %v2211_v52  ;;  %2251 = vst.msk [vmem:[%s5304_s16 + $0x10] sm:$0xff] %vm1848_vm10, %v2222_v30  ;;  %4118 = vmatprep.mubr.msk.f32.mxu0 %vm1848_vm10, %v2222_v30  ;;  %v2188_v57 = vpop.xlane.xlu1 %2187 }
 0x648   : > { %v4400_v1 = vpop.eup %4399  ;;  %v2224_v6 = vmul.f32 %v4398_v39, %v5179_v61  ;;  %v2212_v35 = vmax.f32 %v2188_v57, 1e-12  ;;  %v2191_v37 = vpop.xlane.xlu0 %2190 }
 0x649   : > { %v2226_v60 = vmul.f32 %v4400_v1, %v5188_v17  ;;  %v2213_v45 = vmax.f32 %v2191_v37, 1e-12 }
 0x64a   : > { %2252 = vst.msk [vmem:[%s5304_s16 + $0x18] sm:$0xff] %vm1848_vm10, %v2224_v6  ;;  %4119 = vmatmul.mubr.msk.f32.gmra.mxu0 %vm1848_vm10, %v2224_v6  ;;  %4413 = vrcp.f32 %v2212_v35 }
 0x64b   : > { %v4402_v5 = vpop.eup %4401  ;;  %2253 = vst.msk [vmem:[%s5304_s16 + $0x20] sm:$0xff] %vm1848_vm10, %v2226_v60  ;;  %4121 = vmatprep.mubr.msk.f32.mxu0 %vm1848_vm10, %v2226_v60  ;;  %v2194_v46 = vpop.xlane.xlu1 %2193  ;;  %4415 = vrcp.f32 %v2213_v45 }
 0x64c   : > { %v4404_v29 = vpop.eup %4403  ;;  %v2228_v61 = vmul.f32 %v4402_v5, %v5201_v34  ;;  %v2214_v19 = vmax.f32 %v2194_v46, 1e-12 }
 0x64d   : > { %v2230_v17 = vmul.f32 %v4404_v29, %v5205_v40  ;;  %v2197_v34 = vpop.xlane.xlu0 %2196 }
 0x64e   : > { %2254 = vst.msk [vmem:[%s5304_s16 + $0x28] sm:$0xff] %vm1848_vm10, %v2228_v61  ;;  %4122 = vmatmul.mubr.msk.f32.gmra.mxu0 %vm1848_vm10, %v2228_v61  ;;  %4417 = vrcp.f32 %v2214_v19  ;;  %v2215_v40 = vmax.f32 %v2197_v34, 1e-12 }
 0x64f   : > { %v4406_v62 = vpop.eup %4405  ;;  %2255 = vst.msk [vmem:[%s5304_s16 + $0x30] sm:$0xff] %vm1848_vm10, %v2230_v17  ;;  %4124 = vmatprep.mubr.msk.f32.mxu0 %vm1848_vm10, %v2230_v17 }
 0x650   : > { %v4408_v7 = vpop.eup %4407  ;;  %v2232_v48 = vmul.f32 %v4406_v62, %v5219_v38  ;;  %4419 = vrcp.f32 %v2215_v40  ;;  %v2200_v53 = vpop.xlane.xlu1 %2199 }
 0x651   : > { %v2234_v49 = vmul.f32 %v4408_v7, %v5223_v22  ;;  %v2216_v33 = vmax.f32 %v2200_v53, 1e-12 }
 0x652   : > { %2256 = vst.msk [vmem:[%s5304_s16 + $0x38] sm:$0xff] %vm1848_vm10, %v2232_v48  ;;  %4125 = vmatmul.mubr.msk.f32.gmra.mxu0 %vm1848_vm10, %v2232_v48 }
 0x653   : > { %v4410_v12 = vpop.eup %4409  ;;  %2257 = vst.msk [vmem:[%s5304_s16 + $0x40] sm:$0xff] %vm1848_vm10, %v2234_v49  ;;  %4127 = vmatprep.mubr.msk.f32.mxu0 %vm1848_vm10, %v2234_v49  ;;  %4421 = vrcp.f32 %v2216_v33 }
 0x654   : > { %v4412_v42 = vpop.eup %4411  ;;  %v2236_v38 = vmul.f32 %v4410_v12, %v5235_v63 }
 0x655   : > { %v2238_v22 = vmul.f32 %v4412_v42, %v5238_v32 }
 0x656   : > { %2258 = vst.msk [vmem:[%s5304_s16 + $0x48] sm:$0xff] %vm1848_vm10, %v2236_v38  ;;  %4128 = vmatmul.mubr.msk.f32.gmra.mxu0 %vm1848_vm10, %v2236_v38 }
 0x657   : > { %2259 = vst.msk [vmem:[%s5304_s16 + $0x50] sm:$0xff] %vm1848_vm10, %v2238_v22  ;;  %4130 = vmatprep.mubr.msk.f32.mxu0 %vm1848_vm10, %v2238_v22  ;;  %v4414_v41 = vpop.eup %4413 }
 0x658   : > { %v2240_v55 = vmul.f32 %v4414_v41, %v5247_v24  ;;  %v4416_v21 = vpop.eup %4415 }
 0x659   : > { %v2242_v32 = vmul.f32 %v4416_v21, %v5255_v28 }
 0x65a   : > { %2260 = vst.msk [vmem:[%s5304_s16 + $0x58] sm:$0xff] %vm1848_vm10, %v2240_v55  ;;  %4131 = vmatmul.mubr.msk.f32.gmra.mxu0 %vm1848_vm10, %v2240_v55 }
 0x65b   : > { %v4418_v63 = vpop.eup %4417  ;;  %2261 = vst.msk [vmem:[%s5304_s16 + $0x60] sm:$0xff] %vm1848_vm10, %v2242_v32  ;;  %4133 = vmatprep.mubr.msk.f32.mxu0 %vm1848_vm10, %v2242_v32 }
 0x65c   : > { %v2244_v47 = vmul.f32 %v4418_v63, %v5262_v31  ;;  %v2715_v31 = vld [vmem:[%s5596_s13] sm:$0xff] }
 0x65d   : > { %v4420_v24 = vpop.eup %4419  ;;  %4165 = vmatprep.subr.mxu0 %v2715_v31 }
 0x65e   : > { %2262 = vst.msk [vmem:[%s5304_s16 + $0x68] sm:$0xff] %vm1848_vm10, %v2244_v47  ;;  %4134 = vmatmul.mubr.msk.f32.gmra.mxu0 %vm1848_vm10, %v2244_v47  ;;  %v2246_v56 = vmul.f32 %v4420_v24, %v5276_v11 }
 0x65f   : > { %4166 = vmatpush3.msra.mxu0 %v2715_v31 }
 0x660   : > { %v4422_v58 = vpop.eup %4421  ;;  %2263 = vst.msk [vmem:[%s5304_s16 + $0x70] sm:$0xff] %vm1848_vm10, %v2246_v56  ;;  %4136 = vmatprep.mubr.msk.f32.mxu0 %vm1848_vm10, %v2246_v56 }
 0x661   : > { %v2248_v28 = vmul.f32 %v4422_v58, %v5286_v43 }
 0x663   : > { %2264 = vst.msk [vmem:[%s5304_s16 + $0x78] sm:$0xff] %vm1848_vm10, %v2248_v28  ;;  %4137 = vmatmul.mubr.msk.f32.gmra.mxu0 %vm1848_vm10, %v2248_v28  ;;  %s5648_s16 = sld [smem:[#allocation22_spill]] }
 0x669   : > { %s5536_s18 = scalar_lea.hbm %s5648_s16, %s3746_s3 }
 0x706   : > { %v4117_v50 = vpop.f32.mrf.mxu0 }
 0x708   : > { %v2387_v59 = vpop.f32.mrf.mxu0 }
 0x709   : > { %4141 = vmatprep.mubr.msk.f32.mxu1 %vm1412_vm11, %v2387_v59 }
 0x70a   : > { %v4120_v11 = vpop.f32.mrf.mxu0  ;;  %4142 = vmatmul.mubr.msk.f32.vlgmr.msra.gmra.mxu1 %vm1412_vm11, %v4117_v50 }
 0x70b   : > { %4192 = vmatpush3.msk.msra.mxu1 %vm1207_vm1, %v2964_v20 }
 0x70c   : > { %v2397_v54 = vpop.f32.mrf.mxu0 }
 0x70d   : > { %4144 = vmatprep.mubr.msk.f32.mxu1 %vm1412_vm11, %v2397_v54 }
 0x70e   : > { %v4123_v43 = vpop.f32.mrf.mxu0  ;;  %4145 = vmatmul.mubr.msk.f32.gmra.mxu1 %vm1412_vm11, %v4120_v11 }
 0x710   : > { %v2407_v0 = vpop.f32.mrf.mxu0 }
 0x711   : > { %4147 = vmatprep.mubr.msk.f32.mxu1 %vm1412_vm11, %v2407_v0 }
 0x712   : > { %v4126_v14 = vpop.f32.mrf.mxu0  ;;  %4148 = vmatmul.mubr.msk.f32.gmra.mxu1 %vm1412_vm11, %v4123_v43 }
 0x714   : > { %v2417_v2 = vpop.f32.mrf.mxu0 }
 0x715   : > { %4150 = vmatprep.mubr.msk.f32.mxu1 %vm1412_vm11, %v2417_v2 }
 0x716   : > { %v4129_v8 = vpop.f32.mrf.mxu0  ;;  %4151 = vmatmul.mubr.msk.f32.gmra.mxu1 %vm1412_vm11, %v4126_v14 }
 0x718   : > { %v2427_v9 = vpop.f32.mrf.mxu0 }
 0x719   : > { %4153 = vmatprep.mubr.msk.f32.mxu1 %vm1412_vm11, %v2427_v9 }
 0x71a   : > { %4154 = vmatmul.mubr.msk.f32.gmra.mxu1 %vm1412_vm11, %v4129_v8  ;;  %v4132_v10 = vpop.f32.mrf.mxu0 }
 0x71c   : > { %v2437_v36 = vpop.f32.mrf.mxu0 }
 0x71d   : > { %4156 = vmatprep.mubr.msk.f32.mxu1 %vm1412_vm11, %v2437_v36 }
 0x71e   : > { %v4135_v51 = vpop.f32.mrf.mxu0  ;;  %4157 = vmatmul.mubr.msk.f32.gmra.mxu1 %vm1412_vm11, %v4132_v10 }
 0x720   : > { %v2447_v3 = vpop.f32.mrf.mxu0 }
 0x721   : > { %4159 = vmatprep.mubr.msk.f32.mxu1 %vm1412_vm11, %v2447_v3 }
 0x722   : > { %4160 = vmatmul.mubr.msk.f32.gmra.mxu1 %vm1412_vm11, %v4135_v51 }
 0x723   : > { %v4138_v13 = vpop.f32.mrf.mxu0 }
 0x725   : > { %v2457_v18 = vpop.f32.mrf.mxu0 }
 0x726   : > { %4162 = vmatprep.mubr.msk.f32.mxu1 %vm1412_vm11, %v2457_v18 }
 0x727   : > { %4163 = vmatmul.mubr.msk.f32.gmra.mxu1 %vm1412_vm11, %v4138_v13 }
 0x7ca   : > { %v4143_v25 = vpop.f32.mrf.mxu1 }
 0x7cb   : > { %v2594_v16 = vadd.f32 %v4143_v25, %v5397_v23 }
 0x7cc   : > { %v2588_v26 = vpop.f32.mrf.mxu1 }
 0x7cd   : > { %v2589_v44 = vadd.f32 %v5397_v23, %v2588_v26  ;;  %v2684_v15 = vmul.f32 0.2, %v2594_v16  ;;  %vm2668_vm12 = vcmp.ge.f32.partialorder %v2594_v16, 0.0 }
 0x7ce   : > { %v4146_v27 = vpop.f32.mrf.mxu1 }
 0x7cf   : > { %vm2667_vm13 = vcmp.ge.f32.partialorder %v2589_v44, 0.0  ;;  %v2683_v4 = vmul.f32 0.2, %v2589_v44  ;;  %v2604_v52 = vadd.f32 %v4146_v27, %v5397_v23  ;;  %v2700_v57 = vsel %vm2668_vm12, %v2594_v16, %v2684_v15  ;;  %v3216_v16 = vld [vmem:[%s5600_s17] sm:$0x3] }
 0x7d0   : > { %v2598_v30 = vpop.f32.mrf.mxu1  ;;  %4217 = vmatprep.subr.msk.mxu0 %vm953_vm0, %v3216_v16 }
 0x7d1   : > { %v2599_v39 = vadd.f32 %v5397_v23, %v2598_v30  ;;  %v2699_v1 = vsel %vm2667_vm13, %v2589_v44, %v2683_v4  ;;  %v2686_v6 = vmul.f32 0.2, %v2604_v52  ;;  %vm2670_vm1 = vcmp.ge.f32.partialorder %v2604_v52, 0.0 }
 0x7d2   : > { %v4149_v35 = vpop.f32.mrf.mxu1  ;;  %4167 = vmatprep.mubr.msk.f32.mxu0 %vm1412_vm11, %v2699_v1 }
 0x7d3   : > { %vm2669_vm14 = vcmp.ge.f32.partialorder %v2599_v39, 0.0  ;;  %v2685_v60 = vmul.f32 0.2, %v2599_v39  ;;  %v2614_v5 = vadd.f32 %v4149_v35, %v5397_v23  ;;  %4168 = vmatmul.mubr.msk.f32.vlgmr.msra.gmra.mxu0 %vm1412_vm11, %v2700_v57  ;;  %v2702_v19 = vsel %vm2670_vm1, %v2604_v52, %v2686_v6 }
 0x7d4   : > { %v2608_v37 = vpop.f32.mrf.mxu1  ;;  %4218 = vmatpush3.msk.msra.mxu0 %vm953_vm0, %v3216_v16 }
 0x7d5   : > { %v2609_v29 = vadd.f32 %v5397_v23, %v2608_v37  ;;  %v2701_v45 = vsel %vm2669_vm14, %v2599_v39, %v2685_v60  ;;  %v2688_v46 = vmul.f32 0.2, %v2614_v5  ;;  %vm2672_vm15 = vcmp.ge.f32.partialorder %v2614_v5, 0.0 }
 0x7d6   : > { %v4152_v61 = vpop.f32.mrf.mxu1  ;;  %4170 = vmatprep.mubr.msk.f32.mxu0 %vm1412_vm11, %v2701_v45 }
 0x7d7   : > { %vm2671_vm3 = vcmp.ge.f32.partialorder %v2609_v29, 0.0  ;;  %v2687_v17 = vmul.f32 0.2, %v2609_v29  ;;  %v2624_v62 = vadd.f32 %v4152_v61, %v5397_v23  ;;  %4171 = vmatmul.mubr.msk.f32.gmra.mxu0 %vm1412_vm11, %v2702_v19  ;;  %v2704_v12 = vsel %vm2672_vm15, %v2614_v5, %v2688_v46 }
 0x7d8   : > { %v2618_v7 = vpop.f32.mrf.mxu1 }
 0x7d9   : > { %v2619_v48 = vadd.f32 %v5397_v23, %v2618_v7  ;;  %v2703_v34 = vsel %vm2671_vm3, %v2609_v29, %v2687_v17  ;;  %v2690_v49 = vmul.f32 0.2, %v2624_v62  ;;  %vm2674_vm4 = vcmp.ge.f32.partialorder %v2624_v62, 0.0 }
 0x7da   : > { %v4155_v40 = vpop.f32.mrf.mxu1  ;;  %4173 = vmatprep.mubr.msk.f32.mxu0 %vm1412_vm11, %v2703_v34 }
 0x7db   : > { %vm2673_vm5 = vcmp.ge.f32.partialorder %v2619_v48, 0.0  ;;  %v2689_v42 = vmul.f32 0.2, %v2619_v48  ;;  %v2634_v53 = vadd.f32 %v4155_v40, %v5397_v23  ;;  %4174 = vmatmul.mubr.msk.f32.gmra.mxu0 %vm1412_vm11, %v2704_v12  ;;  %v2706_v55 = vsel %vm2674_vm4, %v2624_v62, %v2690_v49 }
 0x7dc   : > { %v2628_v38 = vpop.f32.mrf.mxu1 }
 0x7dd   : > { %v2629_v33 = vadd.f32 %v5397_v23, %v2628_v38  ;;  %v2705_v22 = vsel %vm2673_vm5, %v2619_v48, %v2689_v42  ;;  %v2692_v41 = vmul.f32 0.2, %v2634_v53  ;;  %vm2676_vm7 = vcmp.ge.f32.partialorder %v2634_v53, 0.0 }
 0x7de   : > { %4176 = vmatprep.mubr.msk.f32.mxu0 %vm1412_vm11, %v2705_v22  ;;  %v4158_v63 = vpop.f32.mrf.mxu1 }
 0x7df   : > { %vm2675_vm8 = vcmp.ge.f32.partialorder %v2629_v33, 0.0  ;;  %v2691_v21 = vmul.f32 0.2, %v2629_v33  ;;  %4177 = vmatmul.mubr.msk.f32.gmra.mxu0 %vm1412_vm11, %v2706_v55  ;;  %v2644_v32 = vadd.f32 %v4158_v63, %v5397_v23  ;;  %v2708_v58 = vsel %vm2676_vm7, %v2634_v53, %v2692_v41 }
 0x7e0   : > { %v2638_v47 = vpop.f32.mrf.mxu1 }
 0x7e1   : > { %v2707_v24 = vsel %vm2675_vm8, %v2629_v33, %v2691_v21  ;;  %v2639_v56 = vadd.f32 %v5397_v23, %v2638_v47  ;;  %v2694_v28 = vmul.f32 0.2, %v2644_v32  ;;  %vm2678_vm9 = vcmp.ge.f32.partialorder %v2644_v32, 0.0 }
 0x7e2   : > { %4179 = vmatprep.mubr.msk.f32.mxu0 %vm1412_vm11, %v2707_v24  ;;  %v4161_v31 = vpop.f32.mrf.mxu1 }
 0x7e3   : > { %4180 = vmatmul.mubr.msk.f32.gmra.mxu0 %vm1412_vm11, %v2708_v58  ;;  %vm2677_vm10 = vcmp.ge.f32.partialorder %v2639_v56, 0.0  ;;  %v2693_v50 = vmul.f32 0.2, %v2639_v56  ;;  %v2654_v59 = vadd.f32 %v4161_v31, %v5397_v23  ;;  %v2710_v14 = vsel %vm2678_vm9, %v2644_v32, %v2694_v28 }
 0x7e4   : > { %v2648_v11 = vpop.f32.mrf.mxu1 }
 0x7e5   : > { %v2649_v54 = vadd.f32 %v5397_v23, %v2648_v11  ;;  %v2709_v43 = vsel %vm2677_vm10, %v2639_v56, %v2693_v50  ;;  %v2696_v0 = vmul.f32 0.2, %v2654_v59  ;;  %vm2680_vm12 = vcmp.ge.f32.partialorder %v2654_v59, 0.0 }
 0x7e6   : > { %4182 = vmatprep.mubr.msk.f32.mxu0 %vm1412_vm11, %v2709_v43 }
 0x7e7   : > { %vm2679_vm13 = vcmp.ge.f32.partialorder %v2649_v54, 0.0  ;;  %v2695_v2 = vmul.f32 0.2, %v2649_v54  ;;  %4183 = vmatmul.mubr.msk.f32.gmra.mxu0 %vm1412_vm11, %v2710_v14  ;;  %v4164_v9 = vpop.f32.mrf.mxu1  ;;  %v2712_v10 = vsel %vm2680_vm12, %v2654_v59, %v2696_v0 }
 0x7e8   : > { %v2664_v36 = vadd.f32 %v4164_v9, %v5397_v23 }
 0x7e9   : > { %v2711_v8 = vsel %vm2679_vm13, %v2649_v54, %v2695_v2  ;;  %v2658_v51 = vpop.f32.mrf.mxu1 }
 0x7ea   : > { %4185 = vmatprep.mubr.msk.f32.mxu0 %vm1412_vm11, %v2711_v8  ;;  %v2659_v3 = vadd.f32 %v5397_v23, %v2658_v51  ;;  %v2698_v13 = vmul.f32 0.2, %v2664_v36  ;;  %vm2682_vm1 = vcmp.ge.f32.partialorder %v2664_v36, 0.0  ;;  %v5439_v23 = vld [vmem:[%s5597_s14] ss:$0 sm:$0xff] }
 0x7eb   : > { %4186 = vmatmul.mubr.msk.f32.gmra.mxu0 %vm1412_vm11, %v2712_v10 }
 0x7ec   : > { %vm2681_vm14 = vcmp.ge.f32.partialorder %v2659_v3, 0.0  ;;  %v2697_v18 = vmul.f32 0.2, %v2659_v3  ;;  %v2714_v25 = vsel %vm2682_vm1, %v2664_v36, %v2698_v13 }
 0x7ee   : > { %v2713_v20 = vsel %vm2681_vm14, %v2659_v3, %v2697_v18 }
 0x7ef   : > { %4188 = vmatprep.mubr.msk.f32.mxu0 %vm1412_vm11, %v2713_v20 }
 0x7f0   : > { %4189 = vmatmul.mubr.msk.f32.gmra.mxu0 %vm1412_vm11, %v2714_v25 }
 0x893   : > { %v4169_v26 = vpop.f32.mrf.mxu0 }
 0x894   : > { %v2843_v44 = vadd.f32 %v4169_v26, %v5439_v23 }
 0x895   : > { %v2837_v15 = vpop.f32.mrf.mxu0 }
 0x896   : > { %v2838_v27 = vadd.f32 %v5439_v23, %v2837_v15  ;;  %v2933_v4 = vmul.f32 0.2, %v2843_v44  ;;  %vm2917_vm11 = vcmp.ge.f32.partialorder %v2843_v44, 0.0 }
 0x897   : > { %v4172_v52 = vpop.f32.mrf.mxu0 }
 0x898   : > { %vm2916_vm15 = vcmp.ge.f32.partialorder %v2838_v27, 0.0  ;;  %v2932_v30 = vmul.f32 0.2, %v2838_v27  ;;  %v2853_v39 = vadd.f32 %v4172_v52, %v5439_v23  ;;  %v2949_v35 = vsel %vm2917_vm11, %v2843_v44, %v2933_v4  ;;  %v5476_v44 = vld [vmem:[%s5645_s23] ss:$0 sm:$0xff] }
 0x899   : > { %v2847_v1 = vpop.f32.mrf.mxu0 }
 0x89a   : > { %v2848_v57 = vadd.f32 %v5439_v23, %v2847_v1  ;;  %v2948_v6 = vsel %vm2916_vm15, %v2838_v27, %v2932_v30  ;;  %v2935_v60 = vmul.f32 0.2, %v2853_v39  ;;  %vm2919_vm0 = vcmp.ge.f32.partialorder %v2853_v39, 0.0 }
 0x89b   : > { %v4175_v5 = vpop.f32.mrf.mxu0  ;;  %4193 = vmatprep.mubr.msk.f32.mxu1 %vm1158_vm6, %v2948_v6 }
 0x89c   : > { %vm2918_vm3 = vcmp.ge.f32.partialorder %v2848_v57, 0.0  ;;  %v2934_v37 = vmul.f32 0.2, %v2848_v57  ;;  %v2863_v29 = vadd.f32 %v4175_v5, %v5439_v23  ;;  %4194 = vmatmul.mubr.msk.f32.vlgmr.msra.gmra.mxu1 %vm1158_vm6, %v2949_v35  ;;  %v2951_v62 = vsel %vm2919_vm0, %v2853_v39, %v2935_v60 }
 0x89d   : > { %v2857_v45 = vpop.f32.mrf.mxu0 }
 0x89e   : > { %v2858_v46 = vadd.f32 %v5439_v23, %v2857_v45  ;;  %v2950_v61 = vsel %vm2918_vm3, %v2848_v57, %v2934_v37  ;;  %v2937_v19 = vmul.f32 0.2, %v2863_v29  ;;  %vm2921_vm4 = vcmp.ge.f32.partialorder %v2863_v29, 0.0 }
 0x89f   : > { %v4178_v17 = vpop.f32.mrf.mxu0  ;;  %4196 = vmatprep.mubr.msk.f32.mxu1 %vm1158_vm6, %v2950_v61 }
 0x8a0   : > { %vm2920_vm5 = vcmp.ge.f32.partialorder %v2858_v46, 0.0  ;;  %v2936_v7 = vmul.f32 0.2, %v2858_v46  ;;  %v2873_v48 = vadd.f32 %v4178_v17, %v5439_v23  ;;  %4197 = vmatmul.mubr.msk.f32.gmra.mxu1 %vm1158_vm6, %v2951_v62  ;;  %v2953_v53 = vsel %vm2921_vm4, %v2863_v29, %v2937_v19 }
 0x8a1   : > { %v2867_v34 = vpop.f32.mrf.mxu0 }
 0x8a2   : > { %v2868_v49 = vadd.f32 %v5439_v23, %v2867_v34  ;;  %v2952_v40 = vsel %vm2920_vm5, %v2858_v46, %v2936_v7  ;;  %v2939_v12 = vmul.f32 0.2, %v2873_v48  ;;  %vm2923_vm7 = vcmp.ge.f32.partialorder %v2873_v48, 0.0 }
 0x8a3   : > { %v4181_v42 = vpop.f32.mrf.mxu0  ;;  %4199 = vmatprep.mubr.msk.f32.mxu1 %vm1158_vm6, %v2952_v40 }
 0x8a4   : > { %vm2922_vm8 = vcmp.ge.f32.partialorder %v2868_v49, 0.0  ;;  %v2938_v38 = vmul.f32 0.2, %v2868_v49  ;;  %v2883_v33 = vadd.f32 %v4181_v42, %v5439_v23  ;;  %4200 = vmatmul.mubr.msk.f32.gmra.mxu1 %vm1158_vm6, %v2953_v53  ;;  %v2955_v63 = vsel %vm2923_vm7, %v2873_v48, %v2939_v12 }
 0x8a5   : > { %v2877_v22 = vpop.f32.mrf.mxu0 }
 0x8a6   : > { %v2878_v41 = vadd.f32 %v5439_v23, %v2877_v22  ;;  %v2954_v55 = vsel %vm2922_vm8, %v2868_v49, %v2938_v38  ;;  %v2941_v21 = vmul.f32 0.2, %v2883_v33  ;;  %vm2925_vm9 = vcmp.ge.f32.partialorder %v2883_v33, 0.0 }
 0x8a7   : > { %4202 = vmatprep.mubr.msk.f32.mxu1 %vm1158_vm6, %v2954_v55  ;;  %v4184_v47 = vpop.f32.mrf.mxu0 }
 0x8a8   : > { %vm2924_vm10 = vcmp.ge.f32.partialorder %v2878_v41, 0.0  ;;  %v2940_v32 = vmul.f32 0.2, %v2878_v41  ;;  %4203 = vmatmul.mubr.msk.f32.gmra.mxu1 %vm1158_vm6, %v2955_v63  ;;  %v2893_v24 = vadd.f32 %v4184_v47, %v5439_v23  ;;  %v2957_v31 = vsel %vm2925_vm9, %v2883_v33, %v2941_v21 }
 0x8a9   : > { %v2887_v56 = vpop.f32.mrf.mxu0 }
 0x8aa   : > { %v2956_v58 = vsel %vm2924_vm10, %v2878_v41, %v2940_v32  ;;  %v2888_v28 = vadd.f32 %v5439_v23, %v2887_v56  ;;  %v2943_v50 = vmul.f32 0.2, %v2893_v24  ;;  %vm2927_vm12 = vcmp.ge.f32.partialorder %v2893_v24, 0.0 }
 0x8ab   : > { %4205 = vmatprep.mubr.msk.f32.mxu1 %vm1158_vm6, %v2956_v58  ;;  %v4187_v59 = vpop.f32.mrf.mxu0 }
 0x8ac   : > { %4206 = vmatmul.mubr.msk.f32.gmra.mxu1 %vm1158_vm6, %v2957_v31  ;;  %vm2926_vm13 = vcmp.ge.f32.partialorder %v2888_v28, 0.0  ;;  %v2942_v11 = vmul.f32 0.2, %v2888_v28  ;;  %v2903_v54 = vadd.f32 %v4187_v59, %v5439_v23  ;;  %v2959_v8 = vsel %vm2927_vm12, %v2893_v24, %v2943_v50 }
 0x8ad   : > { %v2897_v43 = vpop.f32.mrf.mxu0 }
 0x8ae   : > { %v2898_v0 = vadd.f32 %v5439_v23, %v2897_v43  ;;  %v2958_v14 = vsel %vm2926_vm13, %v2888_v28, %v2942_v11  ;;  %v2945_v2 = vmul.f32 0.2, %v2903_v54  ;;  %vm2929_vm1 = vcmp.ge.f32.partialorder %v2903_v54, 0.0 }
 0x8af   : > { %4208 = vmatprep.mubr.msk.f32.mxu1 %vm1158_vm6, %v2958_v14 }
 0x8b0   : > { %vm2928_vm14 = vcmp.ge.f32.partialorder %v2898_v0, 0.0  ;;  %v2944_v9 = vmul.f32 0.2, %v2898_v0  ;;  %4209 = vmatmul.mubr.msk.f32.gmra.mxu1 %vm1158_vm6, %v2959_v8  ;;  %v4190_v36 = vpop.f32.mrf.mxu0  ;;  %v2961_v51 = vsel %vm2929_vm1, %v2903_v54, %v2945_v2 }
 0x8b1   : > { %v2913_v3 = vadd.f32 %v4190_v36, %v5439_v23 }
 0x8b2   : > { %v2960_v10 = vsel %vm2928_vm14, %v2898_v0, %v2944_v9  ;;  %v2907_v13 = vpop.f32.mrf.mxu0 }
 0x8b3   : > { %4211 = vmatprep.mubr.msk.f32.mxu1 %vm1158_vm6, %v2960_v10  ;;  %v2908_v18 = vadd.f32 %v5439_v23, %v2907_v13  ;;  %v2947_v20 = vmul.f32 0.2, %v2913_v3  ;;  %vm2931_vm11 = vcmp.ge.f32.partialorder %v2913_v3, 0.0 }
 0x8b4   : > { %4212 = vmatmul.mubr.msk.f32.gmra.mxu1 %vm1158_vm6, %v2961_v51 }
 0x8b5   : > { %vm2930_vm15 = vcmp.ge.f32.partialorder %v2908_v18, 0.0  ;;  %v2946_v25 = vmul.f32 0.2, %v2908_v18  ;;  %v2963_v26 = vsel %vm2931_vm11, %v2913_v3, %v2947_v20 }
 0x8b7   : > { %v2962_v16 = vsel %vm2930_vm15, %v2908_v18, %v2946_v25 }
 0x8b8   : > { %4214 = vmatprep.mubr.msk.f32.mxu1 %vm1158_vm6, %v2962_v16 }
 0x8b9   : > { %4215 = vmatmul.mubr.msk.f32.gmra.mxu1 %vm1158_vm6, %v2963_v26 }
 0x95c   : > { %v4195_v15 = vpop.f32.mrf.mxu1 }
 0x95d   : > { %v3095_v27 = vadd.f32 %v4195_v15, %v5476_v44 }
 0x95e   : > { %v3089_v4 = vpop.f32.mrf.mxu1 }
 0x95f   : > { %v3090_v23 = vadd.f32 %v5476_v44, %v3089_v4  ;;  %v3185_v52 = vmul.f32 0.2, %v3095_v27  ;;  %vm3169_vm0 = vcmp.ge.f32.partialorder %v3095_v27, 0.0 }
 0x960   : > { %v4198_v30 = vpop.f32.mrf.mxu1 }
 0x961   : > { %vm3168_vm3 = vcmp.ge.f32.partialorder %v3090_v23, 0.0  ;;  %v3184_v39 = vmul.f32 0.2, %v3090_v23  ;;  %v3105_v1 = vadd.f32 %v4198_v30, %v5476_v44  ;;  %v3201_v60 = vsel %vm3169_vm0, %v3095_v27, %v3185_v52  ;;  %v3722_v27 = vld [vmem:[%s5646_s1] ss:$0 sm:$0xff]  ;;  %s4457_s1 = scalar_lea.vmem %s4456_s25, 4096 }
 0x962   : > { %v3099_v57 = vpop.f32.mrf.mxu1  ;;  %p4459_p8 = scmp.lt.s32.totalorder %s4457_s1, %s4451_s27 }
 0x963   : > { %v3100_v6 = vadd.f32 %v5476_v44, %v3099_v57  ;;  %v3200_v35 = vsel %vm3168_vm3, %v3090_v23, %v3184_v39  ;;  %v3187_v5 = vmul.f32 0.2, %v3105_v1  ;;  %vm3171_vm6 = vcmp.ge.f32.partialorder %v3105_v1, 0.0 }
 0x964   : > { %v4201_v37 = vpop.f32.mrf.mxu1  ;;  %4219 = vmatprep.mubr.msk.f32.mxu0 %vm904_vm2, %v3200_v35  ;;  %p4460_p10 = por %p4459_p8, %p4458_p7 }
 0x965   : > { %vm3170_vm4 = vcmp.ge.f32.partialorder %v3100_v6, 0.0  ;;  %v3186_v29 = vmul.f32 0.2, %v3100_v6  ;;  %v3115_v45 = vadd.f32 %v4201_v37, %v5476_v44  ;;  %4220 = vmatmul.mubr.msk.f32.vlgmr.msra.gmra.mxu0 %vm904_vm2, %v3201_v60  ;;  %v3203_v7 = vsel %vm3171_vm6, %v3105_v1, %v3187_v5 }
 0x966   : > { %v3109_v46 = vpop.f32.mrf.mxu1  ;;  %p4461_p0 = pnand %p4460_p10, %p4454_p5 }
 0x967   : > { %v3110_v61 = vadd.f32 %v5476_v44, %v3109_v46  ;;  %v3202_v19 = vsel %vm3170_vm4, %v3100_v6, %v3186_v29  ;;  %v3189_v17 = vmul.f32 0.2, %v3115_v45  ;;  %vm3173_vm5 = vcmp.ge.f32.partialorder %v3115_v45, 0.0 }
 0x968   : > { %v4204_v62 = vpop.f32.mrf.mxu1  ;;  %4222 = vmatprep.mubr.msk.f32.mxu0 %vm904_vm2, %v3202_v19 }
 0x969   : > { %vm3172_vm7 = vcmp.ge.f32.partialorder %v3110_v61, 0.0  ;;  %v3188_v48 = vmul.f32 0.2, %v3110_v61  ;;  %v3125_v34 = vadd.f32 %v4204_v62, %v5476_v44  ;;  %4223 = vmatmul.mubr.msk.f32.gmra.mxu0 %vm904_vm2, %v3203_v7  ;;  %v3205_v38 = vsel %vm3173_vm5, %v3115_v45, %v3189_v17 }
 0x96a   : > { %v3119_v49 = vpop.f32.mrf.mxu1 }
 0x96b   : > { %v3120_v40 = vadd.f32 %v5476_v44, %v3119_v49  ;;  %v3204_v12 = vsel %vm3172_vm7, %v3110_v61, %v3188_v48  ;;  %v3191_v42 = vmul.f32 0.2, %v3125_v34  ;;  %vm3175_vm8 = vcmp.ge.f32.partialorder %v3125_v34, 0.0 }
 0x96c   : > { %v4207_v53 = vpop.f32.mrf.mxu1  ;;  %4225 = vmatprep.mubr.msk.f32.mxu0 %vm904_vm2, %v3204_v12 }
 0x96d   : > { %vm3174_vm9 = vcmp.ge.f32.partialorder %v3120_v40, 0.0  ;;  %v3190_v33 = vmul.f32 0.2, %v3120_v40  ;;  %v3135_v22 = vadd.f32 %v4207_v53, %v5476_v44  ;;  %4226 = vmatmul.mubr.msk.f32.gmra.mxu0 %vm904_vm2, %v3205_v38  ;;  %v3207_v32 = vsel %vm3175_vm8, %v3125_v34, %v3191_v42 }
 0x96e   : > { %v3129_v41 = vpop.f32.mrf.mxu1 }
 0x96f   : > { %v3130_v55 = vadd.f32 %v5476_v44, %v3129_v41  ;;  %v3206_v21 = vsel %vm3174_vm9, %v3120_v40, %v3190_v33  ;;  %v3193_v63 = vmul.f32 0.2, %v3135_v22  ;;  %vm3177_vm10 = vcmp.ge.f32.partialorder %v3135_v22, 0.0 }
 0x970   : > { %4228 = vmatprep.mubr.msk.f32.mxu0 %vm904_vm2, %v3206_v21  ;;  %v4210_v24 = vpop.f32.mrf.mxu1 }
 0x971   : > { %vm3176_vm12 = vcmp.ge.f32.partialorder %v3130_v55, 0.0  ;;  %v3192_v47 = vmul.f32 0.2, %v3130_v55  ;;  %4229 = vmatmul.mubr.msk.f32.gmra.mxu0 %vm904_vm2, %v3207_v32  ;;  %v3145_v56 = vadd.f32 %v4210_v24, %v5476_v44  ;;  %v3209_v50 = vsel %vm3177_vm10, %v3135_v22, %v3193_v63 }
 0x972   : > { %v3139_v58 = vpop.f32.mrf.mxu1 }
 0x973   : > { %v3208_v28 = vsel %vm3176_vm12, %v3130_v55, %v3192_v47  ;;  %v3140_v31 = vadd.f32 %v5476_v44, %v3139_v58  ;;  %v3195_v59 = vmul.f32 0.2, %v3145_v56  ;;  %vm3179_vm13 = vcmp.ge.f32.partialorder %v3145_v56, 0.0 }
 0x974   : > { %4231 = vmatprep.mubr.msk.f32.mxu0 %vm904_vm2, %v3208_v28  ;;  %v4213_v11 = vpop.f32.mrf.mxu1 }
 0x975   : > { %4232 = vmatmul.mubr.msk.f32.gmra.mxu0 %vm904_vm2, %v3209_v50  ;;  %vm3178_vm1 = vcmp.ge.f32.partialorder %v3140_v31, 0.0  ;;  %v3194_v54 = vmul.f32 0.2, %v3140_v31  ;;  %v3155_v43 = vadd.f32 %v4213_v11, %v5476_v44  ;;  %v3211_v9 = vsel %vm3179_vm13, %v3145_v56, %v3195_v59 }
 0x976   : > { %v3149_v0 = vpop.f32.mrf.mxu1 }
 0x977   : > { %v3150_v14 = vadd.f32 %v5476_v44, %v3149_v0  ;;  %v3210_v2 = vsel %vm3178_vm1, %v3140_v31, %v3194_v54  ;;  %v3197_v8 = vmul.f32 0.2, %v3155_v43  ;;  %vm3181_vm14 = vcmp.ge.f32.partialorder %v3155_v43, 0.0 }
 0x978   : > { %4234 = vmatprep.mubr.msk.f32.mxu0 %vm904_vm2, %v3210_v2 }
 0x979   : > { %vm3180_vm11 = vcmp.ge.f32.partialorder %v3150_v14, 0.0  ;;  %v3196_v10 = vmul.f32 0.2, %v3150_v14  ;;  %4235 = vmatmul.mubr.msk.f32.gmra.mxu0 %vm904_vm2, %v3211_v9  ;;  %v4216_v51 = vpop.f32.mrf.mxu1  ;;  %v3213_v3 = vsel %vm3181_vm14, %v3155_v43, %v3197_v8 }
 0x97a   : > { %v3165_v13 = vadd.f32 %v4216_v51, %v5476_v44 }
 0x97b   : > { %v3212_v36 = vsel %vm3180_vm11, %v3150_v14, %v3196_v10  ;;  %v3159_v18 = vpop.f32.mrf.mxu1 }
 0x97c   : > { %4237 = vmatprep.mubr.msk.f32.mxu0 %vm904_vm2, %v3212_v36  ;;  %v3160_v20 = vadd.f32 %v5476_v44, %v3159_v18  ;;  %v3199_v25 = vmul.f32 0.2, %v3165_v13  ;;  %vm3183_vm15 = vcmp.ge.f32.partialorder %v3165_v13, 0.0 }
 0x97d   : > { %4238 = vmatmul.mubr.msk.f32.gmra.mxu0 %vm904_vm2, %v3213_v3 }
 0x97e   : > { %vm3182_vm0 = vcmp.ge.f32.partialorder %v3160_v20, 0.0  ;;  %v3198_v16 = vmul.f32 0.2, %v3160_v20  ;;  %v3215_v15 = vsel %vm3183_vm15, %v3165_v13, %v3199_v25 }
 0x980   : > { %v3214_v26 = vsel %vm3182_vm0, %v3160_v20, %v3198_v16 }
 0x981   : > { %4240 = vmatprep.mubr.msk.f32.mxu0 %vm904_vm2, %v3214_v26 }
 0x982   : > { %4241 = vmatmul.mubr.msk.f32.gmra.mxu0 %vm904_vm2, %v3215_v15 }
 0xa25   : > { %v4221_v4 = vpop.f32.mrf.mxu0 }
 0xa26   : > { %v3347_v23 = vadd.f32 %v4221_v4, %v3722_v27 }
 0xa27   : > { %v3341_v52 = vpop.f32.mrf.mxu0 }
 0xa28   : > { %3421 = vst [vmem:[%s5515_s0 + $0x8] sm:$0xff] %v3347_v23  ;;  %v3342_v44 = vadd.f32 %v3722_v27, %v3341_v52 }
 0xa29   : > { %v4224_v30 = vpop.f32.mrf.mxu0 }
 0xa2a   : > { %3420 = vst [vmem:[%s5515_s0] sm:$0xff] %v3342_v44  ;;  %v3357_v39 = vadd.f32 %v4224_v30, %v3722_v27 }
 0xa2b   : > { %v3351_v1 = vpop.f32.mrf.mxu0 }
 0xa2c   : > { %3423 = vst [vmem:[%s5515_s0 + $0x18] sm:$0xff] %v3357_v39  ;;  %v3352_v57 = vadd.f32 %v3722_v27, %v3351_v1 }
 0xa2d   : > { %v4227_v6 = vpop.f32.mrf.mxu0 }
 0xa2e   : > { %3422 = vst [vmem:[%s5515_s0 + $0x10] sm:$0xff] %v3352_v57  ;;  %v3367_v35 = vadd.f32 %v4227_v6, %v3722_v27 }
 0xa2f   : > { %v3361_v60 = vpop.f32.mrf.mxu0 }
 0xa30   : > { %3425 = vst [vmem:[%s5515_s0 + $0x28] sm:$0xff] %v3367_v35  ;;  %v3362_v5 = vadd.f32 %v3722_v27, %v3361_v60 }
 0xa31   : > { %v4230_v37 = vpop.f32.mrf.mxu0 }
 0xa32   : > { %3424 = vst [vmem:[%s5515_s0 + $0x20] sm:$0xff] %v3362_v5  ;;  %v3377_v29 = vadd.f32 %v4230_v37, %v3722_v27 }
 0xa33   : > { %v3371_v45 = vpop.f32.mrf.mxu0 }
 0xa34   : > { %3427 = vst [vmem:[%s5515_s0 + $0x38] sm:$0xff] %v3377_v29  ;;  %v3372_v46 = vadd.f32 %v3722_v27, %v3371_v45 }
 0xa35   : > { %v4233_v61 = vpop.f32.mrf.mxu0 }
 0xa36   : > { %3426 = vst [vmem:[%s5515_s0 + $0x30] sm:$0xff] %v3372_v46  ;;  %v3387_v19 = vadd.f32 %v4233_v61, %v3722_v27 }
 0xa37   : > { %v3381_v17 = vpop.f32.mrf.mxu0 }
 0xa38   : > { %3429 = vst [vmem:[%s5515_s0 + $0x48] sm:$0xff] %v3387_v19  ;;  %v3382_v62 = vadd.f32 %v3722_v27, %v3381_v17 }
 0xa39   : > { %v4236_v7 = vpop.f32.mrf.mxu0 }
 0xa3a   : > { %3428 = vst [vmem:[%s5515_s0 + $0x40] sm:$0xff] %v3382_v62  ;;  %v3397_v48 = vadd.f32 %v4236_v7, %v3722_v27 }
 0xa3b   : > { %v3391_v34 = vpop.f32.mrf.mxu0 }
 0xa3c   : > { %3431 = vst [vmem:[%s5515_s0 + $0x58] sm:$0xff] %v3397_v48  ;;  %v3392_v49 = vadd.f32 %v3722_v27, %v3391_v34 }
 0xa3d   : > { %v4239_v40 = vpop.f32.mrf.mxu0 }
 0xa3e   : > { %3430 = vst [vmem:[%s5515_s0 + $0x50] sm:$0xff] %v3392_v49  ;;  %v3407_v12 = vadd.f32 %v4239_v40, %v3722_v27 }
 0xa3f   : > { %v3401_v42 = vpop.f32.mrf.mxu0 }
 0xa40   : > { %3433 = vst [vmem:[%s5515_s0 + $0x68] sm:$0xff] %v3407_v12  ;;  %v3402_v53 = vadd.f32 %v3722_v27, %v3401_v42 }
 0xa42   : > { %3432 = vst [vmem:[%s5515_s0 + $0x60] sm:$0xff] %v3402_v53  ;;  %v4242_v38 = vpop.f32.mrf.mxu0 }
 0xa43   : > { %v3417_v33 = vadd.f32 %v4242_v38, %v3722_v27 }
 0xa44   : > { %v3411_v22 = vpop.f32.mrf.mxu0 }
 0xa45   : > { %3435 = vst [vmem:[%s5515_s0 + $0x78] sm:$0xff] %v3417_v33  ;;  %v3412_v41 = vadd.f32 %v3722_v27, %v3411_v22 }
 0xa47   : > { %3434 = vst [vmem:[%s5515_s0 + $0x70] sm:$0xff] %v3412_v41 }
 0xa48   : > { %4464 = shalt.err (!%p4461_p0)
}
 0xa49   : > { %s4465_s0 = scalar_lea.hbm %s5536_s18, 2048  ;;  %s4469_s21 = scalar_lea.hbm %s5648_s16, 4096 }
 0xa4a   : > { %p4466_p2 = scmp.ne.s32.totalorder %s5536_s18, %s4465_s0  ;;  %p4470_p3 = scmp.lt.s32.totalorder %s5536_s18, %s5648_s16 }
 0xa4b   : > { %p4471_p6 = scmp.lt.s32.totalorder %s4469_s21, %s4465_s0 }
 0xa4c   : > { %p4467_p9 = pnand %p4466_p2, %p5649_p13 }
 0xa4d   : > { %p4472_p11 = por %p4471_p6, %p4470_p3 }
 0xa4e   : > { %p4468_p1 = pneg %p4467_p9 }
 0xa50   : > { %p4473_p12 = pnand %p4472_p11, %p4468_p1 }
 0xa52   : > { %4476 = shalt.err (!%p4473_p12)
}
 0xa53   : > { %s4521_s27 = smov 128   ;;  %s4522_s25 = smov 8  }
 0xa54   : > { %s5650_s1 = scalar_lea.sflag [#allocation4], %s4725_s28 }
 0xa55   : > { %4247 = dma.vmem_to_hbm [thread:$0]  (%p5649_p13), %s5538_s29, 2048, %s5536_s18, %s5650_s1, %s4521_s27, %s4521_s27, %s4522_s25  }
 0xa56 PF: > { %s5651_s3 = sld [smem:[#allocation8_spill]]  ;;  %p5654_p5 = scmp.ge.s32.totalorder %s4515_s24, 2 }
 0xa57   : > { %s5652_s26 = sld [smem:[#allocation13_spill]] }
 0xa5c   : > { %s3474_s5 = sand.u32 1, %s5651_s3  }
 0xa5d   : > { %p5653_p4 = scmp.ne.s32.totalorder %s5652_s26, 0  ;;  %s3475_s23 = scalar_lea.sflag [#allocation4], %s3474_s5 }
 0xa5f   : > { %p4254_p7 = pnand %p5654_p5, %p5653_p4 }
 0xa61   : > { %p4255_p8 = pneg %p4254_p7 }
 0xa63   : > { %4498 = dma.done.wait (%p4255_p8), %s3475_s23, 2048  }
 0xa64   : > { %4500 = vsyncadd (%p4255_p8), %s3475_s23, 4294965248  ;;  %s5655_s24 = sld [smem:[#allocation10_spill]]  ;;  %s5658_s1 = smov %s4507_s22 }
 0xa65   : > { %s5656_s0 = sld [smem:[#allocation9_spill]] }
 0xa66   : > { %s5657_s23 = sld [smem:[#allocation11_spill]] }
 0xa6a   : > { %p34_p10 = scmp.ge.s32.totalorder %s5655_s24, 4  }
 0xa6b   : > { %s5659_s22 = smov %s5656_s0 }
 0xa6c   :  { %36 = sbr.rel (!%p34_p10) target bundleno = 15 (0xf), region = 153 }
 0xa71   :  { %3488 = vsyncpa [#allocation3], 1 }
 0xa72   :  { %3490 = vsyncpa [#allocation3 + $0x1], 1 }
 0xa73   :  { %3491 = vsyncpa [#allocation4], 1 }
 0xa74   :  { %3493 = vsyncpa [#allocation4 + $0x1], 1 }

</bundles_post_ra>
